<compile_context>
chip_gen: v6e
topology: v6e:2x2x1
jax: 0.10.0
libtpu: 0.0.40
codegen_flags: <defaults>
</compile_context>

<pallas_src>
import functools

import jax
import jax.numpy as jnp
from jax import lax
from jax.experimental import pallas as pl
from jax.experimental.pallas import tpu as pltpu

EPS = 1e-5
LANE = 128
# Safe across generations: well under v7x's 64 MiB per-TC VMEM, and the per-image
# blocks used here need far less.  (v5e/v6e could raise this to 64-96 MiB together
# with bigger tiles, but do NOT copy that tuning to v7x.)
VMEM_LIMIT_BYTES = 32 * 1024 * 1024


def _round_up(x, m):
    return (x + m - 1) // m * m


# ----------------- single-buffering of grid-invariant operands (probed) -----------------

def _probe_single_buffering():
    """True iff pl.BlockSpec(..., pipeline_mode=pl.Buffered(1)) constructs, lowers and
    runs on this jax/libtpu.  Falls back to default double-buffering otherwise so the
    main kernels always compile."""
    try:
        def k(x_ref, o_ref):
            o_ref[...] = x_ref[...] + 1.0

        spec = pl.BlockSpec((8, LANE), lambda i: (0, 0), pipeline_mode=pl.Buffered(1))
        out = pl.pallas_call(
            k,
            out_shape=jax.ShapeDtypeStruct((8, LANE), jnp.float32),
            grid=(2,),
            in_specs=[spec],
            out_specs=pl.BlockSpec((8, LANE), lambda i: (0, 0)),
        )(jnp.zeros((8, LANE), jnp.float32))
        jax.block_until_ready(out)
        return True
    except Exception:
        return False


_SINGLE_BUFFER_OK = _probe_single_buffering()


def _resident_spec(block_shape, index_map):
    """BlockSpec for an operand whose block index never changes: single-buffer it
    when supported (halves its VMEM footprint; biggest benefit on v7x)."""
    if _SINGLE_BUFFER_OK:
        return pl.BlockSpec(block_shape, index_map, pipeline_mode=pl.Buffered(1))
    return pl.BlockSpec(block_shape, index_map)


# ----------------- Pass 1: shifted-tap conv + per-image BN partial sums -----------------

def _make_conv_stats_kernel(kh, kw, stride, Ho, Wo):
    taps = [(i, j) for i in range(kh) for j in range(kw)]

    def kernel(x_ref, w_ref, y_ref, part_ref):
        # x_ref:    (Hp, Wp, Cin_p) f32   padded NHWC image (read once from HBM)
        # w_ref:    (kh*kw, Cin_p, Cp) bf16  per-tap weights (grid-invariant)
        # y_ref:    (Cp, Ho*Wo) bf16     raw conv output, channel-major
        # part_ref: (2, Cp) f32          per-image (sum, sum_sq) of y
        acc = None
        for t, (i, j) in enumerate(taps):
            if stride == 1:
                xt = x_ref[i:i + Ho, j:j + Wo, :]
            else:
                # TODO(synk): validate the strided-tap load path for stride > 1 on the
                # target toolchain (the shipped test exercises stride == 1 only).
                xt = x_ref[pl.ds(i, Ho, stride=stride),
                           pl.ds(j, Wo, stride=stride), :]
            xt = xt.reshape(Ho * Wo, xt.shape[-1]).astype(jnp.bfloat16)
            part = jnp.dot(xt, w_ref[t], preferred_element_type=jnp.float32)
            acc = part if acc is None else acc + part

        # BN partial sums: two direct stores (no concatenate relayout).
        # TODO(synk): E[y^2] - mean^2 can cancel catastrophically for very large M;
        # switch to a centered / Welford-style combine if this ever feeds training.
        part_ref[0:1, :] = jnp.sum(acc, axis=0, keepdims=True)
        part_ref[1:2, :] = jnp.sum(acc * acc, axis=0, keepdims=True)

        # bf16 + channel-major store: halves the inter-pass HBM round trip and makes
        # the final NCHW result transpose-free.
        y_ref[...] = acc.T.astype(y_ref.dtype)

    return kernel


# ----------------- Pass 2: normalize with global stats (pure elementwise) ---------------

def _norm_kernel(y_ref, scale_ref, shift_ref, o_ref):
    # y_ref: (Cp, Ho*Wo) bf16; scale/shift: (Cp, 1) f32; o_ref: (Cp, Ho*Wo) f32.
    o_ref[...] = y_ref[...].astype(jnp.float32) * scale_ref[...] + shift_ref[...]


# -------------------------------------- Wrapper -----------------------------------------

@functools.partial(jax.jit, static_argnames=("stride", "padding", "lane_multiple"))
def conv_norm2d(x, weight, gamma, beta, *, stride=1, padding=0, lane_multiple=LANE):
    """x: (N, Cin, H, W) NCHW; weight: (Cout, Cin, kH, kW); gamma/beta: (Cout,).

    lane_multiple: channel padding granularity.  128 suits v5e (4x128 MXU); set 256
    on v6e/v7x when Cout > 128 to fill their 256-wide MXUs once pass 1 is
    compute-bound.
    """
    N, Cin, H, W = x.shape
    Cout, _, kh, kw = weight.shape
    Ho = (H + 2 * padding - kh) // stride + 1
    Wo = (W + 2 * padding - kw) // stride + 1
    HoWo = Ho * Wo
    Hp, Wp = H + 2 * padding, W + 2 * padding

    Cp = _round_up(Cout, lane_multiple)
    Cin_p = _round_up(Cin, 8)      # keep the contraction dim sublane-friendly

    # NCHW -> padded NHWC slab, read once per image inside the kernel (no im2col).
    # TODO(synk): feed this slab as bf16 once packed-sublane tap slicing is validated
    # on the target toolchain (halves the already k*k-deflated input read).
    x_slab = jnp.transpose(x.astype(jnp.float32), (0, 2, 3, 1))
    x_slab = jnp.pad(x_slab, ((0, 0), (padding, padding), (padding, padding),
                              (0, Cin_p - Cin)))

    # (Cout, Cin, kh, kw) -> per-tap (kh*kw, Cin_p, Cp), zero-padded, bf16.
    w_taps = jnp.transpose(weight.astype(jnp.float32), (2, 3, 1, 0))
    w_taps = w_taps.reshape(kh * kw, Cin, Cout)
    w_taps = jnp.pad(w_taps, ((0, 0), (0, Cin_p - Cin), (0, Cp - Cout)))
    w_taps = w_taps.astype(jnp.bfloat16)

    flops1 = 2 * N * HoWo * (kh * kw * Cin_p) * Cp
    bytes1 = (N * Hp * Wp * Cin_p * 4 + kh * kw * Cin_p * Cp * 2
              + N * Cp * HoWo * 2 + N * 2 * Cp * 4)

    y_raw, partials = pl.pallas_call(
        _make_conv_stats_kernel(kh, kw, stride, Ho, Wo),
        out_shape=(
            jax.ShapeDtypeStruct((N, Cp, HoWo), jnp.bfloat16),   # bf16 intermediate y
            jax.ShapeDtypeStruct((N, 2, Cp), jnp.float32),       # per-image partials
        ),
        grid_spec=pltpu.PrefetchScalarGridSpec(
            num_scalar_prefetch=0,
            grid=(N,),
            in_specs=[
                pl.BlockSpec((None, Hp, Wp, Cin_p), lambda n: (n, 0, 0, 0)),
                _resident_spec((kh * kw, Cin_p, Cp), lambda n: (0, 0, 0)),
            ],
            out_specs=[
                pl.BlockSpec((None, Cp, HoWo), lambda n: (n, 0, 0)),
                pl.BlockSpec((None, 2, Cp), lambda n: (n, 0, 0)),
            ],
        ),
        compiler_params=pltpu.CompilerParams(
            dimension_semantics=("parallel",),
            vmem_limit_bytes=VMEM_LIMIT_BYTES,
        ),
        cost_estimate=pl.CostEstimate(
            flops=flops1, transcendentals=0, bytes_accessed=bytes1),
    )(x_slab, w_taps)
    # TODO(synk): for very large kh*kw*Cin*Cp weights or very large images, add a
    # tap/Cout grid axis with an f32 VMEM accumulator (pl.when init/finalize) so VMEM
    # stays bounded instead of keeping everything resident per image.

    # Tiny global combine of the per-image partial sums (pure JAX, f32).
    m_count = float(N * HoWo)
    mean = jnp.sum(partials[:, 0, :], axis=0) / m_count                   # (Cp,)
    var = jnp.maximum(jnp.sum(partials[:, 1, :], axis=0) / m_count
                      - mean * mean, 0.0)                                 # biased (train)
    gamma_p = jnp.pad(gamma.astype(jnp.float32).reshape(-1), (0, Cp - Cout))
    beta_p = jnp.pad(beta.astype(jnp.float32).reshape(-1), (0, Cp - Cout))
    scale = gamma_p * lax.rsqrt(var + EPS)
    shift = beta_p - mean * scale

    # Pass 2: whole-image (Cp, Ho*Wo) tiles, lane-dense.  y is dead afterwards; it is
    # not aliased with the output only because the output stays f32 to preserve the
    # module's dtype (alias via input_output_aliases if a bf16 output is acceptable).
    bytes2 = N * Cp * HoWo * (2 + 4) + 2 * Cp * 4
    out_cm = pl.pallas_call(
        _norm_kernel,
        out_shape=jax.ShapeDtypeStruct((N, Cp, HoWo), jnp.float32),
        grid_spec=pltpu.PrefetchScalarGridSpec(
            num_scalar_prefetch=0,
            grid=(N,),
            in_specs=[
                pl.BlockSpec((None, Cp, HoWo), lambda n: (n, 0, 0)),
                _resident_spec((Cp, 1), lambda n: (0, 0)),
                _resident_spec((Cp, 1), lambda n: (0, 0)),
            ],
            out_specs=pl.BlockSpec((None, Cp, HoWo), lambda n: (n, 0, 0)),
        ),
        compiler_params=pltpu.CompilerParams(
            dimension_semantics=("parallel",),
            vmem_limit_bytes=VMEM_LIMIT_BYTES,
        ),
        cost_estimate=pl.CostEstimate(
            flops=2 * N * Cp * HoWo, transcendentals=0, bytes_accessed=bytes2),
    )(y_raw, scale.reshape(Cp, 1), shift.reshape(Cp, 1))

    # Channel-major already matches NCHW: only slice off the channel padding (a no-op
    # when Cout is a multiple of lane_multiple).  No transpose.
    return out_cm[:, :Cout, :].reshape(N, Cout, Ho, Wo)


def _reference(x, weight, gamma, beta, stride, padding):
    # Pure-JAX f32 reference for sanity checking.
    y = jax.lax.conv_general_dilated(
        x.astype(jnp.float32), weight.astype(jnp.float32),
        window_strides=(stride, stride),
        padding=[(padding, padding), (padding, padding)],
        dimension_numbers=("NCHW", "OIHW", "NCHW"))
    mean = jnp.mean(y, axis=(0, 2, 3), keepdims=True)
    var = jnp.mean((y - mean) ** 2, axis=(0, 2, 3), keepdims=True)
    yhat = (y - mean) * jax.lax.rsqrt(var + EPS)
    return yhat * gamma.reshape(1, -1, 1, 1) + beta.reshape(1, -1, 1, 1)


if __name__ == "__main__":
    # Small, module-consistent shapes.
    N, Cin, H, W = 2, 4, 16, 16
    Cout, ksize, stride, padding = 8, 3, 1, 1

    key = jax.random.PRNGKey(0)
    kx, kw_key = jax.random.split(key)
    x = jax.random.normal(kx, (N, Cin, H, W), dtype=jnp.float32)

    # Deterministic parameter init mirroring the module's __init__:
    # kaiming_normal_(mode='fan_out', nonlinearity='relu') -> std = sqrt(2/fan_out)
    fan_out = Cout * ksize * ksize
    std = (2.0 / fan_out) ** 0.5
    weight = std * jax.random.normal(kw_key, (Cout, Cin, ksize, ksize), dtype=jnp.float32)
    gamma = jnp.ones((Cout,), dtype=jnp.float32)   # norm.weight = 1
    beta = jnp.zeros((Cout,), dtype=jnp.float32)   # norm.bias = 0

    out = conv_norm2d(x, weight, gamma, beta, stride=stride, padding=padding)
    out = jax.block_until_ready(out)

    ref = _reference(x, weight, gamma, beta, stride, padding)
    assert out.shape == (N, Cout, H, W), out.shape
    # bf16 matmul inputs + bf16 intermediate y -> loosened tolerance vs f32 reference.
    err = float(jnp.max(jnp.abs(out - ref)))
    assert jnp.allclose(out, ref, atol=5e-2, rtol=5e-2), err

    print("KERNEL_OK")
</pallas_src>

<mosaic_0001>
module attributes {stable_mosaic.version = 11 : i64} {
  func.func @k(%arg0: i32, %arg1: memref<8x128xf32, #tpu.memory_space<vmem>>, %arg2: memref<8x128xf32, #tpu.memory_space<vmem>>) attributes {dimension_semantics = [#tpu.dimension_semantics<arbitrary>], iteration_bounds = array<i64: 2>, scalar_prefetch = 0 : i64, scratch_operands = 0 : i64, tpu.core_type = #tpu.core_type<tc>, window_params = [{pipeline_mode = #tpu.pipeline_mode<synchronous>, transform_indices = @transform_0, window_bounds = array<i64: 8, 128>}, {pipeline_mode = #tpu.pipeline_mode<synchronous>, transform_indices = @transform_1, window_bounds = array<i64: 8, 128>}]} {
    %c0 = arith.constant 0 : index
    %c0_0 = arith.constant 0 : index
    %0 = vector.load %arg1[%c0, %c0_0] : memref<8x128xf32, #tpu.memory_space<vmem>>, vector<8x128xf32>
    %cst = arith.constant 1.000000e+00 : f32
    %1 = vector.broadcast %cst : f32 to vector<8x128xf32>
    %2 = arith.addf %0, %1 : vector<8x128xf32>
    %c0_1 = arith.constant 0 : index
    %c0_2 = arith.constant 0 : index
    %3 = vector.load %arg2[%c0_1, %c0_2] : memref<8x128xf32, #tpu.memory_space<vmem>>, vector<8x128xf32>
    tpu.vector_store %arg2[%c0_1, %c0_2], %2 {strides = array<i32>} : memref<8x128xf32, #tpu.memory_space<vmem>>, vector<8x128xf32>,
    return
  }
  func.func @transform_0(%arg0: i32) -> (i32, i32) {
    %c0_i32 = arith.constant 0 : i32
    %c0_i32_0 = arith.constant 0 : i32
    %c0_i32_1 = arith.constant 0 : i32
    return %c0_i32, %c0_i32_0 : i32, i32
  }
  func.func @transform_1(%arg0: i32) -> (i32, i32) {
    %c0_i32 = arith.constant 0 : i32
    %c0_i32_0 = arith.constant 0 : i32
    %c0_i32_1 = arith.constant 0 : i32
    return %c0_i32, %c0_i32_0 : i32, i32
  }
}

module attributes {stable_mosaic.version = 11 : i64} {
  func.func @_norm_kernel(%arg0: i32, %arg1: memref<1x128x256xbf16, #tpu.memory_space<vmem>>, %arg2: memref<128x1xf32, #tpu.memory_space<vmem>>, %arg3: memref<128x1xf32, #tpu.memory_space<vmem>>, %arg4: memref<1x128x256xf32, #tpu.memory_space<vmem>>) attributes {dimension_semantics = [#tpu.dimension_semantics<parallel>], iteration_bounds = array<i64: 2>, scalar_prefetch = 0 : i64, scratch_operands = 0 : i64, tpu.core_type = #tpu.core_type<tc>, window_params = [{transform_indices = @transform_0, window_bounds = array<i64: 1, 128, 256>}, {pipeline_mode = #tpu.pipeline_mode<synchronous>, transform_indices = @transform_1, window_bounds = array<i64: 128, 1>}, {pipeline_mode = #tpu.pipeline_mode<synchronous>, transform_indices = @transform_2, window_bounds = array<i64: 128, 1>}, {transform_indices = @transform_3, window_bounds = array<i64: 1, 128, 256>}]} {
    %c0 = arith.constant 0 : index
    %c0_0 = arith.constant 0 : index
    %c0_1 = arith.constant 0 : index
    %0 = vector.load %arg1[%c0, %c0_0, %c0_1] : memref<1x128x256xbf16, #tpu.memory_space<vmem>>, vector<1x128x256xbf16>
    %1 = vector.shape_cast %0 : vector<1x128x256xbf16> to vector<128x256xbf16>
    %2 = arith.extf %1 : vector<128x256xbf16> to vector<128x256xf32>
    %c0_2 = arith.constant 0 : index
    %c0_3 = arith.constant 0 : index
    %3 = vector.load %arg2[%c0_2, %c0_3] : memref<128x1xf32, #tpu.memory_space<vmem>>, vector<128x1xf32>
    %4 = vector.broadcast %3 : vector<128x1xf32> to vector<128x256xf32>
    %5 = arith.mulf %2, %4 : vector<128x256xf32>
    %c0_4 = arith.constant 0 : index
    %c0_5 = arith.constant 0 : index
    %6 = vector.load %arg3[%c0_4, %c0_5] : memref<128x1xf32, #tpu.memory_space<vmem>>, vector<128x1xf32>
    %7 = vector.broadcast %6 : vector<128x1xf32> to vector<128x256xf32>
    %8 = arith.addf %5, %7 : vector<128x256xf32>
    %c0_6 = arith.constant 0 : index
    %c0_7 = arith.constant 0 : index
    %c0_8 = arith.constant 0 : index
    %9 = vector.load %arg4[%c0_6, %c0_7, %c0_8] : memref<1x128x256xf32, #tpu.memory_space<vmem>>, vector<1x128x256xf32>
    %10 = vector.shape_cast %9 : vector<1x128x256xf32> to vector<128x256xf32>
    %11 = vector.shape_cast %8 : vector<128x256xf32> to vector<1x128x256xf32>
    tpu.vector_store %arg4[%c0_6, %c0_7, %c0_8], %11 {strides = array<i32>} : memref<1x128x256xf32, #tpu.memory_space<vmem>>, vector<1x128x256xf32>,
    return
  }
  func.func @transform_0(%arg0: i32) -> (i32, i32, i32) {
    %c0_i32 = arith.constant 0 : i32
    %c0_i32_0 = arith.constant 0 : i32
    %c0_i32_1 = arith.constant 0 : i32
    return %arg0, %c0_i32, %c0_i32_0 : i32, i32, i32
  }
  func.func @transform_1(%arg0: i32) -> (i32, i32) {
    %c0_i32 = arith.constant 0 : i32
    %c0_i32_0 = arith.constant 0 : i32
    %c0_i32_1 = arith.constant 0 : i32
    return %c0_i32, %c0_i32_0 : i32, i32
  }
  func.func @transform_2(%arg0: i32) -> (i32, i32) {
    %c0_i32 = arith.constant 0 : i32
    %c0_i32_0 = arith.constant 0 : i32
    %c0_i32_1 = arith.constant 0 : i32
    return %c0_i32, %c0_i32_0 : i32, i32
  }
  func.func @transform_3(%arg0: i32) -> (i32, i32, i32) {
    %c0_i32 = arith.constant 0 : i32
    %c0_i32_0 = arith.constant 0 : i32
    %c0_i32_1 = arith.constant 0 : i32
    return %arg0, %c0_i32, %c0_i32_0 : i32, i32, i32
  }
}

module attributes {stable_mosaic.version = 11 : i64} {
  func.func @kernel(%arg0: i32, %arg1: memref<1x18x18x8xf32, #tpu.memory_space<vmem>>, %arg2: memref<9x8x128xbf16, #tpu.memory_space<vmem>>, %arg3: memref<1x128x256xbf16, #tpu.memory_space<vmem>>, %arg4: memref<1x2x128xf32, #tpu.memory_space<vmem>>) attributes {dimension_semantics = [#tpu.dimension_semantics<parallel>], iteration_bounds = array<i64: 2>, scalar_prefetch = 0 : i64, scratch_operands = 0 : i64, tpu.core_type = #tpu.core_type<tc>, window_params = [{transform_indices = @transform_0, window_bounds = array<i64: 1, 18, 18, 8>}, {pipeline_mode = #tpu.pipeline_mode<synchronous>, transform_indices = @transform_1, window_bounds = array<i64: 9, 8, 128>}, {transform_indices = @transform_2, window_bounds = array<i64: 1, 128, 256>}, {transform_indices = @transform_3, window_bounds = array<i64: 1, 2, 128>}]} {
    %c0 = arith.constant 0 : index
    %c0_0 = arith.constant 0 : index
    %c0_1 = arith.constant 0 : index
    %c0_2 = arith.constant 0 : index
    %0 = vector.load %arg1[%c0, %c0_0, %c0_1, %c0_2] : memref<1x18x18x8xf32, #tpu.memory_space<vmem>>, vector<1x16x16x8xf32>
    %1 = vector.shape_cast %0 : vector<1x16x16x8xf32> to vector<16x16x8xf32>
    %2 = vector.shape_cast %1 : vector<16x16x8xf32> to vector<256x8xf32>
    %3 = arith.truncf %2 : vector<256x8xf32> to vector<256x8xbf16>
    %c0_3 = arith.constant 0 : index
    %c0_4 = arith.constant 0 : index
    %c0_5 = arith.constant 0 : index
    %4 = vector.load %arg2[%c0_3, %c0_4, %c0_5] : memref<9x8x128xbf16, #tpu.memory_space<vmem>>, vector<1x8x128xbf16>
    %5 = vector.shape_cast %4 : vector<1x8x128xbf16> to vector<8x128xbf16>
    %cst = arith.constant dense<0.000000e+00> : vector<256x128xf32>
    %6 = tpu.matmul %3, %5, %cst {dimension_numbers = #tpu.dot_dimension_numbers<[1], [0], [0], [1], [0, 0, 1, 1], [], []>} : vector<256x8xbf16>, vector<8x128xbf16>, vector<256x128xf32> -> vector<256x128xf32>
    %c0_6 = arith.constant 0 : index
    %c0_7 = arith.constant 0 : index
    %c1 = arith.constant 1 : index
    %c0_8 = arith.constant 0 : index
    %7 = vector.load %arg1[%c0_6, %c0_7, %c1, %c0_8] : memref<1x18x18x8xf32, #tpu.memory_space<vmem>>, vector<1x16x16x8xf32>
    %8 = vector.shape_cast %7 : vector<1x16x16x8xf32> to vector<16x16x8xf32>
    %9 = vector.shape_cast %8 : vector<16x16x8xf32> to vector<256x8xf32>
    %10 = arith.truncf %9 : vector<256x8xf32> to vector<256x8xbf16>
    %c1_9 = arith.constant 1 : index
    %c0_10 = arith.constant 0 : index
    %c0_11 = arith.constant 0 : index
    %11 = vector.load %arg2[%c1_9, %c0_10, %c0_11] : memref<9x8x128xbf16, #tpu.memory_space<vmem>>, vector<1x8x128xbf16>
    %12 = vector.shape_cast %11 : vector<1x8x128xbf16> to vector<8x128xbf16>
    %cst_12 = arith.constant dense<0.000000e+00> : vector<256x128xf32>
    %13 = tpu.matmul %10, %12, %cst_12 {dimension_numbers = #tpu.dot_dimension_numbers<[1], [0], [0], [1], [0, 0, 1, 1], [], []>} : vector<256x8xbf16>, vector<8x128xbf16>, vector<256x128xf32> -> vector<256x128xf32>
    %14 = arith.addf %6, %13 : vector<256x128xf32>
    %c0_13 = arith.constant 0 : index
    %c0_14 = arith.constant 0 : index
    %c2 = arith.constant 2 : index
    %c0_15 = arith.constant 0 : index
    %15 = vector.load %arg1[%c0_13, %c0_14, %c2, %c0_15] : memref<1x18x18x8xf32, #tpu.memory_space<vmem>>, vector<1x16x16x8xf32>
    %16 = vector.shape_cast %15 : vector<1x16x16x8xf32> to vector<16x16x8xf32>
    %17 = vector.shape_cast %16 : vector<16x16x8xf32> to vector<256x8xf32>
    %18 = arith.truncf %17 : vector<256x8xf32> to vector<256x8xbf16>
    %c2_16 = arith.constant 2 : index
    %c0_17 = arith.constant 0 : index
    %c0_18 = arith.constant 0 : index
    %19 = vector.load %arg2[%c2_16, %c0_17, %c0_18] : memref<9x8x128xbf16, #tpu.memory_space<vmem>>, vector<1x8x128xbf16>
    %20 = vector.shape_cast %19 : vector<1x8x128xbf16> to vector<8x128xbf16>
    %cst_19 = arith.constant dense<0.000000e+00> : vector<256x128xf32>
    %21 = tpu.matmul %18, %20, %cst_19 {dimension_numbers = #tpu.dot_dimension_numbers<[1], [0], [0], [1], [0, 0, 1, 1], [], []>} : vector<256x8xbf16>, vector<8x128xbf16>, vector<256x128xf32> -> vector<256x128xf32>
    %22 = arith.addf %14, %21 : vector<256x128xf32>
    %c0_20 = arith.constant 0 : index
    %c1_21 = arith.constant 1 : index
    %c0_22 = arith.constant 0 : index
    %c0_23 = arith.constant 0 : index
    %23 = vector.load %arg1[%c0_20, %c1_21, %c0_22, %c0_23] : memref<1x18x18x8xf32, #tpu.memory_space<vmem>>, vector<1x16x16x8xf32>
    %24 = vector.shape_cast %23 : vector<1x16x16x8xf32> to vector<16x16x8xf32>
    %25 = vector.shape_cast %24 : vector<16x16x8xf32> to vector<256x8xf32>
    %26 = arith.truncf %25 : vector<256x8xf32> to vector<256x8xbf16>
    %c3 = arith.constant 3 : index
    %c0_24 = arith.constant 0 : index
    %c0_25 = arith.constant 0 : index
    %27 = vector.load %arg2[%c3, %c0_24, %c0_25] : memref<9x8x128xbf16, #tpu.memory_space<vmem>>, vector<1x8x128xbf16>
    %28 = vector.shape_cast %27 : vector<1x8x128xbf16> to vector<8x128xbf16>
    %cst_26 = arith.constant dense<0.000000e+00> : vector<256x128xf32>
    %29 = tpu.matmul %26, %28, %cst_26 {dimension_numbers = #tpu.dot_dimension_numbers<[1], [0], [0], [1], [0, 0, 1, 1], [], []>} : vector<256x8xbf16>, vector<8x128xbf16>, vector<256x128xf32> -> vector<256x128xf32>
    %30 = arith.addf %22, %29 : vector<256x128xf32>
    %c0_27 = arith.constant 0 : index
    %c1_28 = arith.constant 1 : index
    %c1_29 = arith.constant 1 : index
    %c0_30 = arith.constant 0 : index
    %31 = vector.load %arg1[%c0_27, %c1_28, %c1_29, %c0_30] : memref<1x18x18x8xf32, #tpu.memory_space<vmem>>, vector<1x16x16x8xf32>
    %32 = vector.shape_cast %31 : vector<1x16x16x8xf32> to vector<16x16x8xf32>
    %33 = vector.shape_cast %32 : vector<16x16x8xf32> to vector<256x8xf32>
    %34 = arith.truncf %33 : vector<256x8xf32> to vector<256x8xbf16>
    %c4 = arith.constant 4 : index
    %c0_31 = arith.constant 0 : index
    %c0_32 = arith.constant 0 : index
    %35 = vector.load %arg2[%c4, %c0_31, %c0_32] : memref<9x8x128xbf16, #tpu.memory_space<vmem>>, vector<1x8x128xbf16>
    %36 = vector.shape_cast %35 : vector<1x8x128xbf16> to vector<8x128xbf16>
    %cst_33 = arith.constant dense<0.000000e+00> : vector<256x128xf32>
    %37 = tpu.matmul %34, %36, %cst_33 {dimension_numbers = #tpu.dot_dimension_numbers<[1], [0], [0], [1], [0, 0, 1, 1], [], []>} : vector<256x8xbf16>, vector<8x128xbf16>, vector<256x128xf32> -> vector<256x128xf32>
    %38 = arith.addf %30, %37 : vector<256x128xf32>
    %c0_34 = arith.constant 0 : index
    %c1_35 = arith.constant 1 : index
    %c2_36 = arith.constant 2 : index
    %c0_37 = arith.constant 0 : index
    %39 = vector.load %arg1[%c0_34, %c1_35, %c2_36, %c0_37] : memref<1x18x18x8xf32, #tpu.memory_space<vmem>>, vector<1x16x16x8xf32>
    %40 = vector.shape_cast %39 : vector<1x16x16x8xf32> to vector<16x16x8xf32>
    %41 = vector.shape_cast %40 : vector<16x16x8xf32> to vector<256x8xf32>
    %42 = arith.truncf %41 : vector<256x8xf32> to vector<256x8xbf16>
    %c5 = arith.constant 5 : index
    %c0_38 = arith.constant 0 : index
    %c0_39 = arith.constant 0 : index
    %43 = vector.load %arg2[%c5, %c0_38, %c0_39] : memref<9x8x128xbf16, #tpu.memory_space<vmem>>, vector<1x8x128xbf16>
    %44 = vector.shape_cast %43 : vector<1x8x128xbf16> to vector<8x128xbf16>
    %cst_40 = arith.constant dense<0.000000e+00> : vector<256x128xf32>
    %45 = tpu.matmul %42, %44, %cst_40 {dimension_numbers = #tpu.dot_dimension_numbers<[1], [0], [0], [1], [0, 0, 1, 1], [], []>} : vector<256x8xbf16>, vector<8x128xbf16>, vector<256x128xf32> -> vector<256x128xf32>
    %46 = arith.addf %38, %45 : vector<256x128xf32>
    %c0_41 = arith.constant 0 : index
    %c2_42 = arith.constant 2 : index
    %c0_43 = arith.constant 0 : index
    %c0_44 = arith.constant 0 : index
    %47 = vector.load %arg1[%c0_41, %c2_42, %c0_43, %c0_44] : memref<1x18x18x8xf32, #tpu.memory_space<vmem>>, vector<1x16x16x8xf32>
    %48 = vector.shape_cast %47 : vector<1x16x16x8xf32> to vector<16x16x8xf32>
    %49 = vector.shape_cast %48 : vector<16x16x8xf32> to vector<256x8xf32>
    %50 = arith.truncf %49 : vector<256x8xf32> to vector<256x8xbf16>
    %c6 = arith.constant 6 : index
    %c0_45 = arith.constant 0 : index
    %c0_46 = arith.constant 0 : index
    %51 = vector.load %arg2[%c6, %c0_45, %c0_46] : memref<9x8x128xbf16, #tpu.memory_space<vmem>>, vector<1x8x128xbf16>
    %52 = vector.shape_cast %51 : vector<1x8x128xbf16> to vector<8x128xbf16>
    %cst_47 = arith.constant dense<0.000000e+00> : vector<256x128xf32>
    %53 = tpu.matmul %50, %52, %cst_47 {dimension_numbers = #tpu.dot_dimension_numbers<[1], [0], [0], [1], [0, 0, 1, 1], [], []>} : vector<256x8xbf16>, vector<8x128xbf16>, vector<256x128xf32> -> vector<256x128xf32>
    %54 = arith.addf %46, %53 : vector<256x128xf32>
    %c0_48 = arith.constant 0 : index
    %c2_49 = arith.constant 2 : index
    %c1_50 = arith.constant 1 : index
    %c0_51 = arith.constant 0 : index
    %55 = vector.load %arg1[%c0_48, %c2_49, %c1_50, %c0_51] : memref<1x18x18x8xf32, #tpu.memory_space<vmem>>, vector<1x16x16x8xf32>
    %56 = vector.shape_cast %55 : vector<1x16x16x8xf32> to vector<16x16x8xf32>
    %57 = vector.shape_cast %56 : vector<16x16x8xf32> to vector<256x8xf32>
    %58 = arith.truncf %57 : vector<256x8xf32> to vector<256x8xbf16>
    %c7 = arith.constant 7 : index
    %c0_52 = arith.constant 0 : index
    %c0_53 = arith.constant 0 : index
    %59 = vector.load %arg2[%c7, %c0_52, %c0_53] : memref<9x8x128xbf16, #tpu.memory_space<vmem>>, vector<1x8x128xbf16>
    %60 = vector.shape_cast %59 : vector<1x8x128xbf16> to vector<8x128xbf16>
    %cst_54 = arith.constant dense<0.000000e+00> : vector<256x128xf32>
    %61 = tpu.matmul %58, %60, %cst_54 {dimension_numbers = #tpu.dot_dimension_numbers<[1], [0], [0], [1], [0, 0, 1, 1], [], []>} : vector<256x8xbf16>, vector<8x128xbf16>, vector<256x128xf32> -> vector<256x128xf32>
    %62 = arith.addf %54, %61 : vector<256x128xf32>
    %c0_55 = arith.constant 0 : index
    %c2_56 = arith.constant 2 : index
    %c2_57 = arith.constant 2 : index
    %c0_58 = arith.constant 0 : index
    %63 = vector.load %arg1[%c0_55, %c2_56, %c2_57, %c0_58] : memref<1x18x18x8xf32, #tpu.memory_space<vmem>>, vector<1x16x16x8xf32>
    %64 = vector.shape_cast %63 : vector<1x16x16x8xf32> to vector<16x16x8xf32>
    %65 = vector.shape_cast %64 : vector<16x16x8xf32> to vector<256x8xf32>
    %66 = arith.truncf %65 : vector<256x8xf32> to vector<256x8xbf16>
    %c8 = arith.constant 8 : index
    %c0_59 = arith.constant 0 : index
    %c0_60 = arith.constant 0 : index
    %67 = vector.load %arg2[%c8, %c0_59, %c0_60] : memref<9x8x128xbf16, #tpu.memory_space<vmem>>, vector<1x8x128xbf16>
    %68 = vector.shape_cast %67 : vector<1x8x128xbf16> to vector<8x128xbf16>
    %cst_61 = arith.constant dense<0.000000e+00> : vector<256x128xf32>
    %69 = tpu.matmul %66, %68, %cst_61 {dimension_numbers = #tpu.dot_dimension_numbers<[1], [0], [0], [1], [0, 0, 1, 1], [], []>} : vector<256x8xbf16>, vector<8x128xbf16>, vector<256x128xf32> -> vector<256x128xf32>
    %70 = arith.addf %62, %69 : vector<256x128xf32>
    %cst_62 = arith.constant dense<0.000000e+00> : vector<128xf32>
    %71 = vector.multi_reduction <add>, %70, %cst_62 [0] : vector<256x128xf32> to vector<128xf32>
    %72 = vector.shape_cast %71 : vector<128xf32> to vector<1x128xf32>
    %c0_63 = arith.constant 0 : index
    %c0_64 = arith.constant 0 : index
    %c0_65 = arith.constant 0 : index
    %73 = vector.load %arg4[%c0_63, %c0_64, %c0_65] : memref<1x2x128xf32, #tpu.memory_space<vmem>>, vector<1x1x128xf32>
    %74 = vector.shape_cast %73 : vector<1x1x128xf32> to vector<1x128xf32>
    %75 = vector.shape_cast %72 : vector<1x128xf32> to vector<1x1x128xf32>
    tpu.vector_store %arg4[%c0_63, %c0_64, %c0_65], %75 {strides = array<i32>} : memref<1x2x128xf32, #tpu.memory_space<vmem>>, vector<1x1x128xf32>,
    %76 = arith.mulf %70, %70 : vector<256x128xf32>
    %cst_66 = arith.constant dense<0.000000e+00> : vector<128xf32>
    %77 = vector.multi_reduction <add>, %76, %cst_66 [0] : vector<256x128xf32> to vector<128xf32>
    %78 = vector.shape_cast %77 : vector<128xf32> to vector<1x128xf32>
    %c0_67 = arith.constant 0 : index
    %c1_68 = arith.constant 1 : index
    %c0_69 = arith.constant 0 : index
    %79 = vector.load %arg4[%c0_67, %c1_68, %c0_69] : memref<1x2x128xf32, #tpu.memory_space<vmem>>, vector<1x1x128xf32>
    %80 = vector.shape_cast %79 : vector<1x1x128xf32> to vector<1x128xf32>
    %81 = vector.shape_cast %78 : vector<1x128xf32> to vector<1x1x128xf32>
    tpu.vector_store %arg4[%c0_67, %c1_68, %c0_69], %81 {strides = array<i32>} : memref<1x2x128xf32, #tpu.memory_space<vmem>>, vector<1x1x128xf32>,
    %82 = tpu.transpose %70, [1, 0] : vector<256x128xf32> -> vector<128x256xf32>
    %83 = arith.truncf %82 : vector<128x256xf32> to vector<128x256xbf16>
    %c0_70 = arith.constant 0 : index
    %c0_71 = arith.constant 0 : index
    %c0_72 = arith.constant 0 : index
    %84 = vector.load %arg3[%c0_70, %c0_71, %c0_72] : memref<1x128x256xbf16, #tpu.memory_space<vmem>>, vector<1x128x256xbf16>
    %85 = vector.shape_cast %84 : vector<1x128x256xbf16> to vector<128x256xbf16>
    %86 = vector.shape_cast %83 : vector<128x256xbf16> to vector<1x128x256xbf16>
    tpu.vector_store %arg3[%c0_70, %c0_71, %c0_72], %86 {strides = array<i32>} : memref<1x128x256xbf16, #tpu.memory_space<vmem>>, vector<1x128x256xbf16>,
    return
  }
  func.func @transform_0(%arg0: i32) -> (i32, i32, i32, i32) {
    %c0_i32 = arith.constant 0 : i32
    %c0_i32_0 = arith.constant 0 : i32
    %c0_i32_1 = arith.constant 0 : i32
    %c0_i32_2 = arith.constant 0 : i32
    return %arg0, %c0_i32, %c0_i32_0, %c0_i32_1 : i32, i32, i32, i32
  }
  func.func @transform_1(%arg0: i32) -> (i32, i32, i32) {
    %c0_i32 = arith.constant 0 : i32
    %c0_i32_0 = arith.constant 0 : i32
    %c0_i32_1 = arith.constant 0 : i32
    %c0_i32_2 = arith.constant 0 : i32
    return %c0_i32, %c0_i32_0, %c0_i32_1 : i32, i32, i32
  }
  func.func @transform_2(%arg0: i32) -> (i32, i32, i32) {
    %c0_i32 = arith.constant 0 : i32
    %c0_i32_0 = arith.constant 0 : i32
    %c0_i32_1 = arith.constant 0 : i32
    return %arg0, %c0_i32, %c0_i32_0 : i32, i32, i32
  }
  func.func @transform_3(%arg0: i32) -> (i32, i32, i32) {
    %c0_i32 = arith.constant 0 : i32
    %c0_i32_0 = arith.constant 0 : i32
    %c0_i32_1 = arith.constant 0 : i32
    return %arg0, %c0_i32, %c0_i32_0 : i32, i32, i32
  }
}

</mosaic_0001>

<bundles_post_ra>
// kernel: tpu_custom_call.1
= control target key start
LH: loop header
LB: loop body
LE: loop exit
PB: predicated region body
PF: predicated region fallthrough
CT: control target
= control target key end

     0   :  { %6 = vsyncpa [#allocation3], 0  ;;  %s305_s0 = inlined_call_operand.hbm [shape: f32[8,128], index: 0, kind: input, shape index: {}]   ;;  %s306_s1 = inlined_call_operand.hbm [shape: f32[8,128], index: 1, kind: output, shape index: {}]  }
   0x1   :  { %7 = vsyncpa [#allocation4], 0  ;;  %s258_s6 = smov 0  }
   0x2 LB: > { %s145_s7 = sadd.s32 4294967295, %s244_s6   ;;  %p146_p0 = scmp.ge.s32.totalorder %s244_s6, 1  ;;  %s244_s6 = sphi %s258_s6, %s13_s6  }
   0x3   : > { %p60_p1 = scmp.lt.s32.totalorder %s244_s6, 3  ;;  %p270_p3 = scmp.eq.s32.totalorder %s145_s7, 0 }
   0x4   : > { %s246_s10 = smov [#allocation2]  }
   0x5   : > { %p266_p2 = pnand %p146_p0, %p60_p1  ;;  %s73_s11 = sshll.u32 %s246_s10, 4  ;;  %s74_s11 = int_to_ptr.vmem [resolvable:$true] %s73_s11 }
   0x6   : > { %s191_s12 = scalar_lea.vmem %s74_s11, 128  ;;  %p199_p10 = scmp.lt.s32.totalorder %s74_s11, %s74_s11 }
   0x7   : > { %p162_p4 = pneg %p266_p2  ;;  %p192_p7 = scmp.ne.s32.totalorder %s74_s11, %s191_s12 }
   0x8   : > { %p200_p11 = scmp.lt.s32.totalorder %s191_s12, %s191_s12 }
   0x9   : > { %p163_p5 = pnand %p270_p3, %p162_p4 }
   0xa   : > { %p201_p12 = por %p200_p11, %p199_p10 }
   0xb   : > { %p182_p6 = pneg %p163_p5 }
   0xd   : > { %p194_p8 = pnand %p192_p7, %p182_p6 }
   0xf   : > { %p195_p9 = pneg %p194_p8 }
  0x11   : > { %p202_p13 = pnand %p201_p12, %p195_p9 }
  0x13   : > { %205 = shalt.err (!%p202_p13)
}
  0x14   : > { %165 = dma.hbm_to_vmem [thread:$0]  (!%p163_p5), %s305_s0, 128, %s74_s11, [#allocation3]  }
  0x15   : > { %86 = sbr.rel (%p266_p2) target bundleno = 42 (0x2a), region = 24 }
  0x1a   : > { %235 = dma.done.wait (%p270_p3), [#allocation3], 128  }
  0x1b   : > { %237 = vsyncadd (%p270_p3), [#allocation3], 4294967168  ;;  %s247_s15 = smov [#allocation5]   ;;  %v96_v0 = vld [vmem:[#allocation2] sm:$0xff]  ;;  %p287_p0 = scmp.eq.s32.totalorder %s145_s7, 1 }
  0x1c   : > { %s106_s16 = sshll.u32 %s247_s15, 4  ;;  %v97_v1 = vadd.f32 1.0, %v96_v0  ;;  %s107_s16 = int_to_ptr.vmem [resolvable:$true] %s106_s16 }
  0x1d   : > { %s206_s18 = scalar_lea.vmem %s107_s16, 128  ;;  %p213_p5 = scmp.lt.s32.totalorder %s107_s16, %s107_s16 }
  0x1e   : > { %98 = vst [vmem:[#allocation5] sm:$0xff] %v97_v1  ;;  %p207_p1 = scmp.ne.s32.totalorder %s107_s16, %s206_s18  ;;  %p214_p6 = scmp.lt.s32.totalorder %s206_s18, %s206_s18 }
  0x20   : > { %p208_p2 = pnand %p207_p1, %p287_p0  ;;  %p215_p7 = por %p214_p6, %p213_p5 }
  0x22   : > { %p209_p4 = pneg %p208_p2 }
  0x24   : > { %p216_p3 = pnand %p215_p7, %p209_p4 }
  0x26   : > { %219 = shalt.err (!%p216_p3)
}
  0x27   : > { %159 = dma.vmem_to_hbm [thread:$0]  (%p287_p0), %s107_s16, 128, %s306_s1, [#allocation4]  }
  0x28   : > { %239 = dma.done.wait (%p287_p0), [#allocation4], 128  }
  0x29   : > { %241 = vsyncadd (%p287_p0), [#allocation4], 4294967168 }
  0x2a PF: > { %s13_s6 = sadd.s32 1, %s244_s6  }
  0x2b   : > { %p10_p8 = scmp.ge.s32.totalorder %s13_s6, 4  }
  0x2d   :  { %12 = sbr.rel (!%p10_p8) target bundleno = 2 (0x2), region = 53 }
  0x32   :  { %119 = vsyncpa [#allocation3], 1 }
  0x33   :  { %121 = vsyncpa [#allocation3 + $0x1], 1 }
  0x34   :  { %122 = vsyncpa [#allocation4], 1 }
  0x35   :  { %124 = vsyncpa [#allocation4 + $0x1], 1 }

// kernel: conv_norm2d.3
= control target key start
LH: loop header
LB: loop body
LE: loop exit
PB: predicated region body
PF: predicated region fallthrough
CT: control target
= control target key end

     0   :  { %s615_s12 = smov 0   ;;  %s836_s0 = inlined_call_operand.vmem [shape: bf16[2,128,256], index: 0, kind: input, shape index: {}]   ;;  %s837_s1 = inlined_call_operand.vmem [shape: f32[128,1], index: 1, kind: input, shape index: {}]   ;;  %s838_s2 = inlined_call_operand.vmem [shape: f32[128,1], index: 2, kind: input, shape index: {}]   ;;  %s839_s3 = inlined_call_operand.vmem [shape: f32[2,128,256], index: 3, kind: output, shape index: {}]  }
   0x1 LB: > { %s562_s13 = sadd.s32 4294967295, %s592_s12   ;;  %p566_p0 = scmp.ge.s32.totalorder %s592_s12, 1  ;;  %s592_s12 = sphi %s615_s12, %s13_s12  }
   0x2   : > { %p137_p1 = scmp.lt.s32.totalorder %s592_s12, 3 }
   0x4   : > { %p138_p2 = pnand %p566_p0, %p137_p1 }
   0x5   : > { %p161_p3 = scmp.lt.s32.totalorder (!%p138_p2), %s562_s13, 1 }
   0x6   : > { %141 = sbr.rel (%p138_p2) target bundleno = 201 (0xc9), region = 32 }
   0xb   : > { %v221_v0 = vld [vmem:[%s837_s1 + $0x10] sm:$0xff]  ;;  %v219_v1 = vld [vmem:[%s837_s1] sm:$0xff]  ;;  %v594_v2 = vmov 0   ;;  %v222_v3 = vld [vmem:[%s837_s1 + $0x18] sm:$0xff]  ;;  %s841_s13 = smov (!%p161_p3, %s562_s13), 1 }
   0xc   : > { %585 = vset.pattern.permute.xlu1 %v594_v2  ;;  %584 = vset.pattern.permute.xlu0 %v594_v2  ;;  %v220_v4 = vld [vmem:[%s837_s1 + $0x8] sm:$0xff]  ;;  %v223_v6 = vld [vmem:[%s837_s1 + $0x20] sm:$0xff]  ;;  %v226_v7 = vld [vmem:[%s837_s1 + $0x38] sm:$0xff]  ;;  %s573_s28 = sshll.u32 %s841_s13, 7  ;;  %s574_s5 = sshll.u32 %s841_s13, 8 }
   0xd   : > { %247 = vperm.xlu1 %585, %v221_v0   ;;  %237 = vperm.xlu0 %584, %v219_v1   ;;  %v224_v5 = vld [vmem:[%s837_s1 + $0x28] sm:$0xff]  ;;  %v225_v8 = vld [vmem:[%s837_s1 + $0x30] sm:$0xff]  ;;  %v227_v10 = vld [vmem:[%s837_s1 + $0x40] sm:$0xff]  ;;  %s745_s4 = scalar_lea.vmem %s836_s0, %s573_s28  ;;  %s765_s8 = scalar_lea.vmem %s839_s3, %s574_s5 }
   0xe   : > { %v228_v9 = vld [vmem:[%s837_s1 + $0x48] sm:$0xff]  ;;  %v230_v11 = vld [vmem:[%s837_s1 + $0x58] sm:$0xff]  ;;  %v229_v12 = vld [vmem:[%s837_s1 + $0x50] sm:$0xff] }
   0xf   : > { %v232_v13 = vld [vmem:[%s837_s1 + $0x68] sm:$0xff]  ;;  %v231_v14 = vld [vmem:[%s837_s1 + $0x60] sm:$0xff]  ;;  %v234_v15 = vld [vmem:[%s837_s1 + $0x78] sm:$0xff] }
  0x10   : > { %v233_v16 = vld [vmem:[%s837_s1 + $0x70] sm:$0xff]  ;;  %v348_v17 = vld [vmem:[%s838_s2 + $0x8] sm:$0xff]  ;;  %v347_v18 = vld [vmem:[%s838_s2] sm:$0xff] }
  0x11   : > { %252 = vperm.xlu1 %585, %v222_v3   ;;  %242 = vperm.xlu0 %584, %v220_v4   ;;  %v350_v19 = vld [vmem:[%s838_s2 + $0x18] sm:$0xff]  ;;  %v349_v20 = vld [vmem:[%s838_s2 + $0x10] sm:$0xff]  ;;  %v352_v21 = vld [vmem:[%s838_s2 + $0x28] sm:$0xff] }
  0x12   : > { %v351_v22 = vld [vmem:[%s838_s2 + $0x20] sm:$0xff]  ;;  %v354_v23 = vld [vmem:[%s838_s2 + $0x38] sm:$0xff]  ;;  %v353_v24 = vld [vmem:[%s838_s2 + $0x30] sm:$0xff] }
  0x13   : > { %v356_v25 = vld [vmem:[%s838_s2 + $0x48] sm:$0xff]  ;;  %v355_v26 = vld [vmem:[%s838_s2 + $0x40] sm:$0xff]  ;;  %v358_v27 = vld [vmem:[%s838_s2 + $0x58] sm:$0xff] }
  0x14   : > { %v357_v28 = vld [vmem:[%s838_s2 + $0x50] sm:$0xff]  ;;  %v360_v29 = vld [vmem:[%s838_s2 + $0x68] sm:$0xff]  ;;  %v359_v30 = vld [vmem:[%s838_s2 + $0x60] sm:$0xff] }
  0x15   : > { %262 = vperm.xlu1 %585, %v224_v5   ;;  %257 = vperm.xlu0 %584, %v223_v6   ;;  %v362_v31 = vld [vmem:[%s838_s2 + $0x78] sm:$0xff]  ;;  %v361_v32 = vld [vmem:[%s838_s2 + $0x70] sm:$0xff]  ;;  %v171_v45 = vld [vmem:[%s745_s4] sm:$0xff] }
  0x16   : > { %v172_v46 = vld [vmem:[%s745_s4 + $0x8] sm:$0xff]  ;;  %v173_v49 = vld [vmem:[%s745_s4 + $0x10] sm:$0xff]  ;;  %v187_v50 = vunpack.c.l.bf16 %v171_v45  ;;  %v188_v51 = vunpack.c.h.bf16 %v171_v45  ;;  %v174_v52 = vld [vmem:[%s745_s4 + $0x18] sm:$0xff] }
  0x17   : > { %v189_v53 = vunpack.c.l.bf16 %v172_v46  ;;  %v190_v54 = vunpack.c.h.bf16 %v172_v46  ;;  %v191_v57 = vunpack.c.l.bf16 %v173_v49  ;;  %v192_v58 = vunpack.c.h.bf16 %v173_v49  ;;  %v176_v1 = vld [vmem:[%s745_s4 + $0x28] sm:$0xff]  ;;  %v175_v2 = vld [vmem:[%s745_s4 + $0x20] sm:$0xff] }
  0x18   : > { %v193_v59 = vunpack.c.l.bf16 %v174_v52  ;;  %v194_v60 = vunpack.c.h.bf16 %v174_v52 }
  0x19   : > { %272 = vperm.xlu1 %585, %v226_v7   ;;  %267 = vperm.xlu0 %584, %v225_v8  }
  0x1d   : > { %282 = vperm.xlu1 %585, %v228_v9   ;;  %277 = vperm.xlu0 %584, %v227_v10   ;;  %v197_v9 = vunpack.c.l.bf16 %v176_v1  ;;  %v198_v10 = vunpack.c.h.bf16 %v176_v1 }
  0x21   : > { %292 = vperm.xlu1 %585, %v230_v11   ;;  %287 = vperm.xlu0 %584, %v229_v12   ;;  %v195_v11 = vunpack.c.l.bf16 %v175_v2  ;;  %v196_v12 = vunpack.c.h.bf16 %v175_v2 }
  0x25   : > { %302 = vperm.xlu1 %585, %v232_v13   ;;  %297 = vperm.xlu0 %584, %v231_v14  }
  0x29   : > { %312 = vperm.xlu1 %585, %v234_v15   ;;  %307 = vperm.xlu0 %584, %v233_v16  }
  0x2d   : > { %370 = vperm.xlu1 %585, %v348_v17   ;;  %365 = vperm.xlu0 %584, %v347_v18   ;;  %v178_v17 = vld [vmem:[%s745_s4 + $0x38] sm:$0xff]  ;;  %v177_v18 = vld [vmem:[%s745_s4 + $0x30] sm:$0xff] }
  0x31   : > { %380 = vperm.xlu1 %585, %v350_v19   ;;  %375 = vperm.xlu0 %584, %v349_v20  }
  0x35   : > { %390 = vperm.xlu1 %585, %v352_v21   ;;  %385 = vperm.xlu0 %584, %v351_v22  }
  0x39   : > { %400 = vperm.xlu1 %585, %v354_v23   ;;  %395 = vperm.xlu0 %584, %v353_v24  }
  0x3d   : > { %410 = vperm.xlu1 %585, %v356_v25   ;;  %405 = vperm.xlu0 %584, %v355_v26   ;;  %v201_v25 = vunpack.c.l.bf16 %v178_v17  ;;  %v202_v26 = vunpack.c.h.bf16 %v178_v17 }
  0x41   : > { %420 = vperm.xlu1 %585, %v358_v27   ;;  %415 = vperm.xlu0 %584, %v357_v28   ;;  %v199_v27 = vunpack.c.l.bf16 %v177_v18  ;;  %v200_v28 = vunpack.c.h.bf16 %v177_v18 }
  0x45   : > { %430 = vperm.xlu1 %585, %v360_v29   ;;  %425 = vperm.xlu0 %584, %v359_v30  }
  0x49   : > { %440 = vperm.xlu1 %585, %v362_v31   ;;  %435 = vperm.xlu0 %584, %v361_v32  }
  0x88   : > { %v248_v33 = vpop.permute.xlu1 %247  ;;  %v238_v34 = vpop.permute.xlu0 %237 }
  0x89   : > { %v315_v61 = vmul.f32 %v238_v34, %v187_v50  ;;  %v316_v62 = vmul.f32 %v238_v34, %v188_v51  ;;  %v319_v13 = vmul.f32 %v248_v33, %v191_v57  ;;  %v320_v14 = vmul.f32 %v248_v33, %v192_v58  ;;  %v180_v33 = vld [vmem:[%s745_s4 + $0x48] sm:$0xff]  ;;  %v179_v34 = vld [vmem:[%s745_s4 + $0x40] sm:$0xff] }
  0x8a   : > { %v205_v50 = vunpack.c.l.bf16 %v180_v33  ;;  %v203_v51 = vunpack.c.l.bf16 %v179_v34  ;;  %v204_v52 = vunpack.c.h.bf16 %v179_v34 }
  0x8c   : > { %v253_v35 = vpop.permute.xlu1 %252  ;;  %v243_v36 = vpop.permute.xlu0 %242 }
  0x8d   : > { %v317_v63 = vmul.f32 %v243_v36, %v189_v53  ;;  %v318_v0 = vmul.f32 %v243_v36, %v190_v54  ;;  %v321_v15 = vmul.f32 %v253_v35, %v193_v59  ;;  %v322_v16 = vmul.f32 %v253_v35, %v194_v60  ;;  %v182_v59 = vld [vmem:[%s745_s4 + $0x58] sm:$0xff]  ;;  %v181_v60 = vld [vmem:[%s745_s4 + $0x50] sm:$0xff] }
  0x8e   : > { %v209_v2 = vunpack.c.l.bf16 %v182_v59 }
  0x90   : > { %v719_v37 = vpop.permute.xlu1 %262  ;;  %v721_v38 = vpop.permute.xlu0 %257 }
  0x91   : > { %v325_v29 = vmul.f32 %v719_v37, %v197_v9  ;;  %v326_v30 = vmul.f32 %v719_v37, %v198_v10  ;;  %v323_v31 = vmul.f32 %v721_v38, %v195_v11  ;;  %v324_v32 = vmul.f32 %v721_v38, %v196_v12  ;;  %v184_v9 = vld [vmem:[%s745_s4 + $0x68] sm:$0xff]  ;;  %v183_v10 = vld [vmem:[%s745_s4 + $0x60] sm:$0xff] }
  0x92   : > { %v206_v38 = vunpack.c.h.bf16 %v180_v33  ;;  %v211_v17 = vunpack.c.l.bf16 %v183_v10  ;;  %v212_v18 = vunpack.c.h.bf16 %v183_v10 }
  0x94   : > { %v725_v39 = vpop.permute.xlu1 %272  ;;  %v727_v40 = vpop.permute.xlu0 %267 }
  0x95   : > { %v329_v53 = vmul.f32 %v725_v39, %v201_v25  ;;  %v330_v54 = vmul.f32 %v725_v39, %v202_v26  ;;  %v327_v57 = vmul.f32 %v727_v40, %v199_v27  ;;  %v328_v58 = vmul.f32 %v727_v40, %v200_v28 }
  0x96   : > { %v210_v40 = vunpack.c.h.bf16 %v182_v59 }
  0x98   : > { %v733_v41 = vpop.permute.xlu1 %282  ;;  %v735_v42 = vpop.permute.xlu0 %277 }
  0x9c   : > { %v738_v43 = vpop.permute.xlu1 %292  ;;  %v740_v44 = vpop.permute.xlu0 %287 }
  0xa0   : > { %v749_v47 = vpop.permute.xlu1 %302  ;;  %v751_v48 = vpop.permute.xlu0 %297 }
  0xa4   : > { %v755_v55 = vpop.permute.xlu1 %312  ;;  %v757_v56 = vpop.permute.xlu0 %307 }
  0xa8   : > { %v371_v3 = vpop.permute.xlu1 %370  ;;  %v366_v4 = vpop.permute.xlu0 %365 }
  0xa9   : > { %v445_v5 = vadd.f32 %v371_v3, %v317_v63  ;;  %v446_v6 = vadd.f32 %v371_v3, %v318_v0  ;;  %v443_v7 = vadd.f32 %v366_v4, %v315_v61  ;;  %v444_v8 = vadd.f32 %v366_v4, %v316_v62 }
  0xaa   : > { %v207_v3 = vunpack.c.l.bf16 %v181_v60  ;;  %v208_v4 = vunpack.c.h.bf16 %v181_v60 }
  0xab   : > { %477 = vst [vmem:[%s765_s8 + $0x10] sm:$0xff] %v445_v5  ;;  %478 = vst [vmem:[%s765_s8 + $0x18] sm:$0xff] %v446_v6  ;;  %v333_v5 = vmul.f32 %v733_v41, %v205_v50  ;;  %v334_v6 = vmul.f32 %v733_v41, %v206_v38 }
  0xac   : > { %475 = vst [vmem:[%s765_s8] sm:$0xff] %v443_v7  ;;  %476 = vst [vmem:[%s765_s8 + $0x8] sm:$0xff] %v444_v8  ;;  %v381_v19 = vpop.permute.xlu1 %380  ;;  %v376_v20 = vpop.permute.xlu0 %375  ;;  %v331_v7 = vmul.f32 %v735_v42, %v203_v51  ;;  %v332_v8 = vmul.f32 %v735_v42, %v204_v52  ;;  %v214_v42 = vunpack.c.h.bf16 %v184_v9 }
  0xad   : > { %v449_v21 = vadd.f32 %v381_v19, %v321_v15  ;;  %v450_v22 = vadd.f32 %v381_v19, %v322_v16  ;;  %v447_v23 = vadd.f32 %v376_v20, %v319_v13  ;;  %v448_v24 = vadd.f32 %v376_v20, %v320_v14 }
  0xae   : > { %v213_v16 = vunpack.c.l.bf16 %v184_v9  ;;  %v337_v19 = vmul.f32 %v738_v43, %v209_v2  ;;  %v338_v20 = vmul.f32 %v738_v43, %v210_v40  ;;  %v342_v34 = vmul.f32 %v749_v47, %v214_v42 }
  0xaf   : > { %481 = vst [vmem:[%s765_s8 + $0x30] sm:$0xff] %v449_v21  ;;  %482 = vst [vmem:[%s765_s8 + $0x38] sm:$0xff] %v450_v22  ;;  %v335_v21 = vmul.f32 %v740_v44, %v207_v3  ;;  %v336_v22 = vmul.f32 %v740_v44, %v208_v4 }
  0xb0   : > { %479 = vst [vmem:[%s765_s8 + $0x20] sm:$0xff] %v447_v23  ;;  %480 = vst [vmem:[%s765_s8 + $0x28] sm:$0xff] %v448_v24  ;;  %v391_v35 = vpop.permute.xlu1 %390  ;;  %v386_v36 = vpop.permute.xlu0 %385  ;;  %v186_v23 = vld [vmem:[%s745_s4 + $0x78] sm:$0xff]  ;;  %v185_v24 = vld [vmem:[%s745_s4 + $0x70] sm:$0xff]  ;;  %v341_v33 = vmul.f32 %v749_v47, %v213_v16 }
  0xb1   : > { %v453_v45 = vadd.f32 %v391_v35, %v325_v29  ;;  %v454_v46 = vadd.f32 %v391_v35, %v326_v30  ;;  %v451_v37 = vadd.f32 %v386_v36, %v323_v31  ;;  %v452_v49 = vadd.f32 %v386_v36, %v324_v32 }
  0xb2   : > { %v217_v30 = vunpack.c.l.bf16 %v186_v23  ;;  %v218_v31 = vunpack.c.h.bf16 %v186_v23  ;;  %v215_v32 = vunpack.c.l.bf16 %v185_v24  ;;  %v216_v44 = vunpack.c.h.bf16 %v185_v24 }
  0xb3   : > { %485 = vst [vmem:[%s765_s8 + $0x50] sm:$0xff] %v453_v45  ;;  %486 = vst [vmem:[%s765_s8 + $0x58] sm:$0xff] %v454_v46  ;;  %v339_v35 = vmul.f32 %v751_v48, %v211_v17  ;;  %v340_v36 = vmul.f32 %v751_v48, %v212_v18 }
  0xb4   : > { %483 = vst [vmem:[%s765_s8 + $0x40] sm:$0xff] %v451_v37  ;;  %484 = vst [vmem:[%s765_s8 + $0x48] sm:$0xff] %v452_v49  ;;  %v401_v61 = vpop.permute.xlu1 %400  ;;  %v396_v62 = vpop.permute.xlu0 %395  ;;  %v345_v47 = vmul.f32 %v755_v55, %v217_v30  ;;  %v346_v48 = vmul.f32 %v755_v55, %v218_v31  ;;  %v343_v51 = vmul.f32 %v757_v56, %v215_v32 }
  0xb5   : > { %v457_v63 = vadd.f32 %v401_v61, %v329_v53  ;;  %v458_v0 = vadd.f32 %v401_v61, %v330_v54  ;;  %v455_v39 = vadd.f32 %v396_v62, %v327_v57  ;;  %v456_v1 = vadd.f32 %v396_v62, %v328_v58 }
  0xb6   : > { %v344_v52 = vmul.f32 %v757_v56, %v216_v44 }
  0xb7   : > { %489 = vst [vmem:[%s765_s8 + $0x70] sm:$0xff] %v457_v63  ;;  %490 = vst [vmem:[%s765_s8 + $0x78] sm:$0xff] %v458_v0 }
  0xb8   : > { %487 = vst [vmem:[%s765_s8 + $0x60] sm:$0xff] %v455_v39  ;;  %488 = vst [vmem:[%s765_s8 + $0x68] sm:$0xff] %v456_v1  ;;  %v411_v11 = vpop.permute.xlu1 %410  ;;  %v406_v12 = vpop.permute.xlu0 %405 }
  0xb9   : > { %v461_v13 = vadd.f32 %v411_v11, %v333_v5  ;;  %v462_v14 = vadd.f32 %v411_v11, %v334_v6  ;;  %v459_v41 = vadd.f32 %v406_v12, %v331_v7  ;;  %v460_v15 = vadd.f32 %v406_v12, %v332_v8 }
  0xbb   : > { %493 = vst [vmem:[%s765_s8 + $0x90] sm:$0xff] %v461_v13  ;;  %494 = vst [vmem:[%s765_s8 + $0x98] sm:$0xff] %v462_v14 }
  0xbc   : > { %491 = vst [vmem:[%s765_s8 + $0x80] sm:$0xff] %v459_v41  ;;  %492 = vst [vmem:[%s765_s8 + $0x88] sm:$0xff] %v460_v15  ;;  %v421_v25 = vpop.permute.xlu1 %420  ;;  %v416_v26 = vpop.permute.xlu0 %415 }
  0xbd   : > { %v465_v27 = vadd.f32 %v421_v25, %v337_v19  ;;  %v466_v28 = vadd.f32 %v421_v25, %v338_v20  ;;  %v463_v29 = vadd.f32 %v416_v26, %v335_v21  ;;  %v464_v43 = vadd.f32 %v416_v26, %v336_v22 }
  0xbf   : > { %497 = vst [vmem:[%s765_s8 + $0xb0] sm:$0xff] %v465_v27  ;;  %498 = vst [vmem:[%s765_s8 + $0xb8] sm:$0xff] %v466_v28 }
  0xc0   : > { %495 = vst [vmem:[%s765_s8 + $0xa0] sm:$0xff] %v463_v29  ;;  %496 = vst [vmem:[%s765_s8 + $0xa8] sm:$0xff] %v464_v43  ;;  %v431_v45 = vpop.permute.xlu1 %430  ;;  %v426_v46 = vpop.permute.xlu0 %425 }
  0xc1   : > { %v469_v37 = vadd.f32 %v431_v45, %v341_v33  ;;  %v470_v49 = vadd.f32 %v431_v45, %v342_v34  ;;  %v467_v50 = vadd.f32 %v426_v46, %v339_v35  ;;  %v468_v38 = vadd.f32 %v426_v46, %v340_v36 }
  0xc3   : > { %501 = vst [vmem:[%s765_s8 + $0xd0] sm:$0xff] %v469_v37  ;;  %502 = vst [vmem:[%s765_s8 + $0xd8] sm:$0xff] %v470_v49 }
  0xc4   : > { %499 = vst [vmem:[%s765_s8 + $0xc0] sm:$0xff] %v467_v50  ;;  %500 = vst [vmem:[%s765_s8 + $0xc8] sm:$0xff] %v468_v38  ;;  %v441_v53 = vpop.permute.xlu1 %440  ;;  %v436_v54 = vpop.permute.xlu0 %435 }
  0xc5   : > { %v473_v57 = vadd.f32 %v441_v53, %v345_v47  ;;  %v474_v58 = vadd.f32 %v441_v53, %v346_v48  ;;  %v471_v59 = vadd.f32 %v436_v54, %v343_v51  ;;  %v472_v60 = vadd.f32 %v436_v54, %v344_v52 }
  0xc7   : > { %505 = vst [vmem:[%s765_s8 + $0xf0] sm:$0xff] %v473_v57  ;;  %506 = vst [vmem:[%s765_s8 + $0xf8] sm:$0xff] %v474_v58 }
  0xc8   : > { %503 = vst [vmem:[%s765_s8 + $0xe0] sm:$0xff] %v471_v59  ;;  %504 = vst [vmem:[%s765_s8 + $0xe8] sm:$0xff] %v472_v60 }
  0xc9 PF: > { %s13_s12 = sadd.s32 1, %s592_s12  }
  0xca   : > { %p10_p4 = scmp.ge.s32.totalorder %s13_s12, 4  }
  0xcc   :  { %12 = sbr.rel (!%p10_p4) target bundleno = 1 (0x1), region = 62 }

// kernel: conv_norm2d.2
= control target key start
LH: loop header
LB: loop body
LE: loop exit
PB: predicated region body
PF: predicated region fallthrough
CT: control target
= control target key end

     0   :  { %s4146_s12 = smov 0   ;;  %s5314_s0 = inlined_call_operand.vmem [shape: f32[2,18,18,8], index: 0, kind: input, shape index: {}]   ;;  %s5315_s1 = inlined_call_operand.vmem [shape: bf16[9,8,128], index: 1, kind: input, shape index: {}]   ;;  %s5316_s2 = inlined_call_operand.vmem [shape: bf16[2,128,256], index: 2, kind: output, shape index: {0}]   ;;  %s5317_s3 = inlined_call_operand.vmem [shape: f32[2,2,128], index: 3, kind: output, shape index: {1}]  }
   0x1 LB: > { %s3138_s13 = sadd.s32 4294967295, %s4124_s12   ;;  %p3142_p0 = scmp.ge.s32.totalorder %s4124_s12, 1  ;;  %s4124_s12 = sphi %s4146_s12, %s14_s12  }
   0x2   : > { %p140_p1 = scmp.lt.s32.totalorder %s4124_s12, 3 }
   0x4   : > { %p141_p2 = pnand %p3142_p0, %p140_p1 }
   0x6   : > { %144 = sbr.rel (%p141_p2) target bundleno = 670 (0x29e), region = 28 }
   0xb   : > { %v3147_v0 = vld [vmem:[%s5315_s1 + $0x4] sm:$0xf]  ;;  %vm331_vm0 = vcmask 1043456   ;;  %p168_p3 = scmp.lt.s32.totalorder %s3138_s13, 1  ;;  %v231_v2 = vld [vmem:[%s5315_s1] sm:$0xf] }
   0xc   : > { %3988 = vmatprep.subr.msk.bf16.mxu1 %vm331_vm0, %v3147_v0  ;;  %3987 = vmatprep.subr.msk.bf16.mxu0 %vm331_vm0, %v3147_v0  ;;  %v333_v1 = vsel %vm331_vm0, %v3147_v0, 0  ;;  %v3180_v3 = vld [vmem:[%s5315_s1 + $0x8] sm:$0xf]  ;;  %vm282_vm1 = vcmask 64512   ;;  %v545_v18 = vsel %vm331_vm0, %v231_v2, 0 }
   0xd   : > { %3986 = vmatpush3.bf16.msra.mxu1 %v333_v1  ;;  %3680 = vmatpush3.bf16.msra.mxu0 %v333_v1  ;;  %s5347_s13 = smov (!%p168_p3, %s3138_s13), 1  ;;  %v807_v15 = vsel %vm331_vm0, %v3180_v3, 0  ;;  %v4208_v24 = vld [vmem:[%s5315_s1 + $0xc] sm:$0xf]  ;;  %v4213_v25 = vld [vmem:[%s5315_s1 + $0x10] sm:$0xf] }
   0xe   : > { %3989 = vmatprep.subr.msk.bf16.mxu1 %vm331_vm0, %v231_v2  ;;  %3990 = vmatprep.subr.msk.bf16.mxu0 %vm331_vm0, %v3180_v3  ;;  %s3997_s20 = smul.u32 432, %s5347_s13  ;;  %s3146_s9 = sshll.u32 %s5347_s13, 1 }
   0xf   : > { %s181_s14 = scalar_lea.vmem %s5317_s3, %s3146_s9  ;;  %s3509_s15 = sshll.u32 %s5347_s13, 7 }
  0x10   : > { %s4174_s23 = scalar_lea.vmem %s5314_s0, %s3997_s20  ;;  %s5293_s18 = scalar_lea.vmem %s5316_s2, %s3509_s15 }
  0x11   : > { %v232_v4 = vld [vmem:[%s4174_s23 + $0x1] sm:$0xff]  ;;  %v233_v5 = vld [vmem:[%s4174_s23 + $0x9] sm:$0xff]  ;;  %v234_v9 = vld [vmem:[%s4174_s23 + $0x19] sm:$0xff] }
  0x12   : > { %v248_v6 = vld [vmem:[%s4174_s23 + $0xc1] sm:$0xff]  ;;  %v264_v7 = vpack.c.bf16 %v233_v5, %v232_v4  ;;  %v249_v8 = vld [vmem:[%s4174_s23 + $0xc9] sm:$0xff]  ;;  %v250_v13 = vld [vmem:[%s4174_s23 + $0xd9] sm:$0xff] }
  0x13   : > { %v235_v10 = vld [vmem:[%s4174_s23 + $0x21] sm:$0xff]  ;;  %v4182_v11 = vpack.c.bf16 %v249_v8, %v248_v6  ;;  %v236_v16 = vld [vmem:[%s4174_s23 + $0x31] sm:$0xff]  ;;  %v237_v19 = vld [vmem:[%s4174_s23 + $0x39] sm:$0xff]  ;;  %v1396_v8 = vsel %vm331_vm0, %v4213_v25, 0 }
  0x14   : > { %v4184_v12 = vpack.c.bf16 %v235_v10, %v234_v9  ;;  %v251_v14 = vld [vmem:[%s4174_s23 + $0xe1] sm:$0xff]  ;;  %3681 = vmatprep.mubr.msk.bf16.mxu0 %vm282_vm1, %v264_v7  ;;  %v252_v20 = vld [vmem:[%s4174_s23 + $0xf1] sm:$0xff]  ;;  %v253_v21 = vld [vmem:[%s4174_s23 + $0xf9] sm:$0xff]  ;;  %v4201_v22 = vpack.c.bf16 %v237_v19, %v236_v16  ;;  %v1102_v10 = vsel %vm331_vm0, %v4208_v24, 0 }
  0x15   : > { %v4191_v17 = vpack.c.bf16 %v251_v14, %v250_v13  ;;  %3697 = vmatprep.mubr.msk.bf16.mxu1 %vm282_vm1, %v4182_v11  ;;  %v4203_v23 = vpack.c.bf16 %v253_v21, %v252_v20  ;;  %v238_v26 = vld [vmem:[%s4174_s23 + $0x49] sm:$0xff]  ;;  %v239_v27 = vld [vmem:[%s4174_s23 + $0x51] sm:$0xff]  ;;  %v240_v30 = vld [vmem:[%s4174_s23 + $0x61] sm:$0xff] }
  0x16   : > { %3682 = vmatmul.mubr.msk.bf16.vlgmr.msra.gmra.mxu0 %vm282_vm1, %v4184_v12  ;;  %v254_v28 = vld [vmem:[%s4174_s23 + $0x109] sm:$0xff]  ;;  %v255_v29 = vld [vmem:[%s4174_s23 + $0x111] sm:$0xff]  ;;  %v256_v32 = vld [vmem:[%s4174_s23 + $0x121] sm:$0xff]  ;;  %v4231_v34 = vpack.c.bf16 %v239_v27, %v238_v26 }
  0x17   : > { %3698 = vmatmul.mubr.msk.bf16.vlgmr.msra.gmra.mxu1 %vm282_vm1, %v4191_v17  ;;  %3748 = vmatpush3.bf16.msra.mxu0 %v807_v15  ;;  %v241_v31 = vld [vmem:[%s4174_s23 + $0x69] sm:$0xff]  ;;  %v4235_v35 = vpack.c.bf16 %v255_v29, %v254_v28  ;;  %v242_v38 = vld [vmem:[%s4174_s23 + $0x79] sm:$0xff]  ;;  %v243_v39 = vld [vmem:[%s4174_s23 + $0x81] sm:$0xff] }
  0x18   : > { %3714 = vmatpush3.bf16.msra.mxu1 %v545_v18  ;;  %3685 = vmatprep.mubr.msk.bf16.mxu0 %vm282_vm1, %v4201_v22  ;;  %v257_v33 = vld [vmem:[%s4174_s23 + $0x129] sm:$0xff]  ;;  %v4237_v36 = vpack.c.bf16 %v241_v31, %v240_v30  ;;  %v258_v40 = vld [vmem:[%s4174_s23 + $0x139] sm:$0xff]  ;;  %v259_v41 = vld [vmem:[%s4174_s23 + $0x141] sm:$0xff]  ;;  %v4257_v46 = vpack.c.bf16 %v243_v39, %v242_v38 }
  0x19   : > { %3701 = vmatprep.mubr.msk.bf16.mxu1 %vm282_vm1, %v4203_v23  ;;  %3991 = vmatprep.subr.msk.bf16.mxu1 %vm331_vm0, %v4208_v24  ;;  %v4239_v37 = vpack.c.bf16 %v257_v33, %v256_v32  ;;  %v244_v42 = vld [vmem:[%s4174_s23 + $0x91] sm:$0xff]  ;;  %v245_v43 = vld [vmem:[%s4174_s23 + $0x99] sm:$0xff]  ;;  %v4259_v47 = vpack.c.bf16 %v259_v41, %v258_v40  ;;  %v246_v50 = vld [vmem:[%s4174_s23 + $0xa9] sm:$0xff] }
  0x1a   : > { %3992 = vmatprep.subr.msk.bf16.mxu0 %vm331_vm0, %v4213_v25  ;;  %v260_v44 = vld [vmem:[%s4174_s23 + $0x151] sm:$0xff]  ;;  %v261_v45 = vld [vmem:[%s4174_s23 + $0x159] sm:$0xff]  ;;  %v4261_v48 = vpack.c.bf16 %v245_v43, %v244_v42  ;;  %v262_v52 = vld [vmem:[%s4174_s23 + $0x169] sm:$0xff] }
  0x1b   : > { %v4263_v49 = vpack.c.bf16 %v261_v45, %v260_v44  ;;  %v247_v51 = vld [vmem:[%s4174_s23 + $0xb1] sm:$0xff]  ;;  %v708_v54 = vld [vmem:[%s4174_s23 + $0x2] sm:$0xff]  ;;  %v710_v62 = vld [vmem:[%s4174_s23 + $0x1a] sm:$0xff] }
  0x1c   : > { %v263_v53 = vld [vmem:[%s4174_s23 + $0x171] sm:$0xff]  ;;  %v183_v56 = vld [vmem:[%s4174_s23] sm:$0xff]  ;;  %v184_v57 = vld [vmem:[%s4174_s23 + $0x8] sm:$0xff]  ;;  %v4281_v58 = vpack.c.bf16 %v247_v51, %v246_v50 }
  0x1d   : > { %v709_v55 = vld [vmem:[%s4174_s23 + $0xa] sm:$0xff]  ;;  %v4283_v59 = vpack.c.bf16 %v263_v53, %v262_v52  ;;  %v215_v61 = vpack.c.bf16 %v184_v57, %v183_v56  ;;  %v711_v63 = vld [vmem:[%s4174_s23 + $0x22] sm:$0xff]  ;;  %v185_v0 = vld [vmem:[%s4174_s23 + $0x18] sm:$0xff] }
  0x1e   : > { %3686 = vmatmul.mubr.msk.bf16.gmra.mxu0 %vm282_vm1, %v4231_v34  ;;  %v740_v60 = vpack.c.bf16 %v709_v55, %v708_v54  ;;  %v186_v1 = vld [vmem:[%s4174_s23 + $0x20] sm:$0xff]  ;;  %v187_v2 = vld [vmem:[%s4174_s23 + $0x30] sm:$0xff]  ;;  %v188_v3 = vld [vmem:[%s4174_s23 + $0x38] sm:$0xff]  ;;  %v4297_v4 = vpack.c.bf16 %v711_v63, %v710_v62 }
  0x1f   : > { %3702 = vmatmul.mubr.msk.bf16.gmra.mxu1 %vm282_vm1, %v4235_v35  ;;  %3689 = vmatprep.mubr.msk.bf16.mxu0 %vm282_vm1, %v4237_v36  ;;  %v712_v5 = vld [vmem:[%s4174_s23 + $0x32] sm:$0xff]  ;;  %v713_v6 = vld [vmem:[%s4174_s23 + $0x3a] sm:$0xff]  ;;  %v4301_v7 = vpack.c.bf16 %v186_v1, %v185_v0  ;;  %v4305_v9 = vpack.c.bf16 %v188_v3, %v187_v2  ;;  %v189_v16 = vld [vmem:[%s4174_s23 + $0x48] sm:$0xff] }
  0x20   : > { %3705 = vmatprep.mubr.msk.bf16.mxu1 %vm282_vm1, %v4239_v37  ;;  %v4309_v13 = vpack.c.bf16 %v713_v6, %v712_v5  ;;  %v4316_v14 = vld [vmem:[%s5315_s1 + $0x14] sm:$0xf]  ;;  %v4321_v15 = vld [vmem:[%s5315_s1 + $0x18] sm:$0xf]  ;;  %v714_v18 = vld [vmem:[%s4174_s23 + $0x4a] sm:$0xff] }
  0x21   : > { %v715_v19 = vld [vmem:[%s4174_s23 + $0x52] sm:$0xff]  ;;  %v716_v21 = vld [vmem:[%s4174_s23 + $0x62] sm:$0xff]  ;;  %v717_v24 = vld [vmem:[%s4174_s23 + $0x6a] sm:$0xff] }
  0x22   : > { %v190_v20 = vld [vmem:[%s4174_s23 + $0x50] sm:$0xff]  ;;  %v191_v25 = vld [vmem:[%s4174_s23 + $0x60] sm:$0xff]  ;;  %v192_v26 = vld [vmem:[%s4174_s23 + $0x68] sm:$0xff]  ;;  %v4339_v27 = vpack.c.bf16 %v715_v19, %v714_v18  ;;  %v4345_v29 = vpack.c.bf16 %v717_v24, %v716_v21 }
  0x23   : > { %v4343_v28 = vpack.c.bf16 %v190_v20, %v189_v16  ;;  %v4347_v30 = vpack.c.bf16 %v192_v26, %v191_v25  ;;  %v193_v31 = vld [vmem:[%s4174_s23 + $0x78] sm:$0xff]  ;;  %v719_v33 = vld [vmem:[%s4174_s23 + $0x82] sm:$0xff]  ;;  %v195_v41 = vld [vmem:[%s4174_s23 + $0x90] sm:$0xff] }
  0x24   : > { %v718_v32 = vld [vmem:[%s4174_s23 + $0x7a] sm:$0xff]  ;;  %v720_v39 = vld [vmem:[%s4174_s23 + $0x92] sm:$0xff]  ;;  %v197_v51 = vld [vmem:[%s4174_s23 + $0xa8] sm:$0xff] }
  0x25   : > { %v194_v38 = vld [vmem:[%s4174_s23 + $0x80] sm:$0xff]  ;;  %v196_v42 = vld [vmem:[%s4174_s23 + $0x98] sm:$0xff]  ;;  %v4365_v43 = vpack.c.bf16 %v719_v33, %v718_v32  ;;  %v722_v52 = vld [vmem:[%s4174_s23 + $0xaa] sm:$0xff] }
  0x26   : > { %3690 = vmatmul.mubr.msk.bf16.gmra.mxu0 %vm282_vm1, %v4257_v46  ;;  %v721_v40 = vld [vmem:[%s4174_s23 + $0x9a] sm:$0xff]  ;;  %v4367_v44 = vpack.c.bf16 %v194_v38, %v193_v31  ;;  %v4371_v50 = vpack.c.bf16 %v196_v42, %v195_v41  ;;  %v723_v53 = vld [vmem:[%s4174_s23 + $0xb2] sm:$0xff]  ;;  %v724_v55 = vld [vmem:[%s4174_s23 + $0xc2] sm:$0xff] }
  0x27   : > { %3706 = vmatmul.mubr.msk.bf16.gmra.mxu1 %vm282_vm1, %v4259_v47  ;;  %3693 = vmatprep.mubr.msk.bf16.mxu0 %vm282_vm1, %v4261_v48  ;;  %v4369_v45 = vpack.c.bf16 %v721_v40, %v720_v39  ;;  %v198_v54 = vld [vmem:[%s4174_s23 + $0xb0] sm:$0xff]  ;;  %v199_v57 = vld [vmem:[%s4174_s23 + $0xc0] sm:$0xff]  ;;  %v201_v1 = vld [vmem:[%s4174_s23 + $0xd8] sm:$0xff] }
  0x28   : > { %3709 = vmatprep.mubr.msk.bf16.mxu1 %vm282_vm1, %v4263_v49  ;;  %v725_v56 = vld [vmem:[%s4174_s23 + $0xca] sm:$0xff]  ;;  %v4391_v62 = vpack.c.bf16 %v198_v54, %v197_v51  ;;  %v726_v2 = vld [vmem:[%s4174_s23 + $0xda] sm:$0xff]  ;;  %v727_v3 = vld [vmem:[%s4174_s23 + $0xe2] sm:$0xff] }
  0x29   : > { %v4393_v63 = vpack.c.bf16 %v725_v56, %v724_v55  ;;  %v202_v5 = vld [vmem:[%s4174_s23 + $0xe0] sm:$0xff]  ;;  %v728_v6 = vld [vmem:[%s4174_s23 + $0xf2] sm:$0xff]  ;;  %v4413_v18 = vpack.c.bf16 %v727_v3, %v726_v2  ;;  %v205_v24 = vld [vmem:[%s4174_s23 + $0x108] sm:$0xff] }
  0x2a   : > { %v204_v16 = vld [vmem:[%s4174_s23 + $0xf8] sm:$0xff]  ;;  %v4415_v19 = vpack.c.bf16 %v202_v5, %v201_v1  ;;  %v730_v25 = vld [vmem:[%s4174_s23 + $0x10a] sm:$0xff]  ;;  %v732_v32 = vld [vmem:[%s4174_s23 + $0x122] sm:$0xff] }
  0x2b   : > { %v731_v26 = vld [vmem:[%s4174_s23 + $0x112] sm:$0xff]  ;;  %v733_v33 = vld [vmem:[%s4174_s23 + $0x12a] sm:$0xff]  ;;  %v207_v38 = vld [vmem:[%s4174_s23 + $0x120] sm:$0xff] }
  0x2c   : > { %v206_v31 = vld [vmem:[%s4174_s23 + $0x110] sm:$0xff]  ;;  %v208_v39 = vld [vmem:[%s4174_s23 + $0x128] sm:$0xff]  ;;  %v4437_v40 = vpack.c.bf16 %v731_v26, %v730_v25  ;;  %v4441_v42 = vpack.c.bf16 %v733_v33, %v732_v32  ;;  %v210_v55 = vld [vmem:[%s4174_s23 + $0x140] sm:$0xff]  ;;  %v1690_v32 = vsel %vm331_vm0, %v4316_v14, 0 }
  0x2d   : > { %v4439_v41 = vpack.c.bf16 %v206_v31, %v205_v24  ;;  %v4443_v51 = vpack.c.bf16 %v208_v39, %v207_v38  ;;  %v735_v54 = vld [vmem:[%s4174_s23 + $0x142] sm:$0xff]  ;;  %v736_v56 = vld [vmem:[%s4174_s23 + $0x152] sm:$0xff]  ;;  %v1985_v31 = vsel %vm331_vm0, %v4321_v15, 0  ;;  %v3425_v33 = vld [vmem:[%s5315_s1 + $0x1c] sm:$0xf] }
  0x2e   : > { %3694 = vmatmul.mubr.msk.bf16.gmra.mxu0 %vm282_vm1, %v4281_v58  ;;  %v212_v1 = vld [vmem:[%s4174_s23 + $0x158] sm:$0xff]  ;;  %v214_v24 = vld [vmem:[%s4174_s23 + $0x170] sm:$0xff] }
  0x2f   : > { %3710 = vmatmul.mubr.msk.bf16.gmra.mxu1 %vm282_vm1, %v4283_v59  ;;  %3749 = vmatprep.mubr.msk.bf16.mxu0 %vm282_vm1, %v740_v60  ;;  %v200_v60 = vld [vmem:[%s4174_s23 + $0xc8] sm:$0xff] }
  0x30   : > { %3715 = vmatprep.mubr.msk.bf16.mxu1 %vm282_vm1, %v215_v61  ;;  %v4389_v61 = vpack.c.bf16 %v723_v53, %v722_v52  ;;  %v4395_v0 = vpack.c.bf16 %v200_v60, %v199_v57  ;;  %v209_v52 = vld [vmem:[%s4174_s23 + $0x138] sm:$0xff]  ;;  %v211_v60 = vld [vmem:[%s4174_s23 + $0x150] sm:$0xff] }
  0x31   : > { %v734_v53 = vld [vmem:[%s4174_s23 + $0x13a] sm:$0xff]  ;;  %v4463_v3 = vpack.c.bf16 %v210_v55, %v209_v52  ;;  %v3326_v55 = vld [vmem:[%s4174_s23 + $0x18a] sm:$0xff] }
  0x32   : > { %v737_v57 = vld [vmem:[%s4174_s23 + $0x15a] sm:$0xff]  ;;  %v4461_v2 = vpack.c.bf16 %v735_v54, %v734_v53  ;;  %v3325_v54 = vld [vmem:[%s4174_s23 + $0x182] sm:$0xff] }
  0x33   : > { %v4465_v5 = vpack.c.bf16 %v737_v57, %v736_v56  ;;  %v3375_v52 = vld [vmem:[%s4174_s23 + $0x1a0] sm:$0xff] }
  0x36   : > { %3750 = vmatmul.mubr.msk.bf16.vlgmr.msra.gmra.mxu0 %vm282_vm1, %v4297_v4 }
  0x37   : > { %3716 = vmatmul.mubr.msk.bf16.vlgmr.msra.gmra.mxu1 %vm282_vm1, %v4301_v7  ;;  %3816 = vmatpush3.bf16.msra.mxu0 %v1396_v8  ;;  %v729_v8 = vld [vmem:[%s4174_s23 + $0xfa] sm:$0xff] }
  0x38   : > { %3782 = vmatpush3.bf16.msra.mxu1 %v1102_v10  ;;  %3719 = vmatprep.mubr.msk.bf16.mxu1 %vm282_vm1, %v4305_v9  ;;  %v203_v10 = vld [vmem:[%s4174_s23 + $0xf0] sm:$0xff]  ;;  %v4417_v20 = vpack.c.bf16 %v729_v8, %v728_v6  ;;  %v4467_v6 = vpack.c.bf16 %v212_v1, %v211_v60 }
  0x39   : > { %3753 = vmatprep.mubr.msk.bf16.mxu0 %vm282_vm1, %v4309_v13  ;;  %3993 = vmatprep.subr.msk.bf16.mxu1 %vm331_vm0, %v4316_v14  ;;  %v4419_v21 = vpack.c.bf16 %v204_v16, %v203_v10  ;;  %v738_v8 = vld [vmem:[%s4174_s23 + $0x16a] sm:$0xff]  ;;  %v739_v10 = vld [vmem:[%s4174_s23 + $0x172] sm:$0xff] }
  0x3a   : > { %3994 = vmatprep.subr.msk.bf16.mxu0 %vm331_vm0, %v4321_v15  ;;  %v213_v16 = vld [vmem:[%s4174_s23 + $0x168] sm:$0xff]  ;;  %v4481_v25 = vpack.c.bf16 %v739_v10, %v738_v8 }
  0x3b   : > { %v4483_v26 = vpack.c.bf16 %v214_v24, %v213_v16 }
  0x3e   : > { %3754 = vmatmul.mubr.msk.bf16.gmra.mxu0 %vm282_vm1, %v4339_v27 }
  0x3f   : > { %3720 = vmatmul.mubr.msk.bf16.gmra.mxu1 %vm282_vm1, %v4343_v28  ;;  %3757 = vmatprep.mubr.msk.bf16.mxu0 %vm282_vm1, %v4345_v29 }
  0x40   : > { %3723 = vmatprep.mubr.msk.bf16.mxu1 %vm282_vm1, %v4347_v30 }
  0x46   : > { %3758 = vmatmul.mubr.msk.bf16.gmra.mxu0 %vm282_vm1, %v4365_v43 }
  0x47   : > { %3724 = vmatmul.mubr.msk.bf16.gmra.mxu1 %vm282_vm1, %v4367_v44  ;;  %3761 = vmatprep.mubr.msk.bf16.mxu0 %vm282_vm1, %v4369_v45 }
  0x48   : > { %3727 = vmatprep.mubr.msk.bf16.mxu1 %vm282_vm1, %v4371_v50 }
  0x4e   : > { %3762 = vmatmul.mubr.msk.bf16.gmra.mxu0 %vm282_vm1, %v4389_v61 }
  0x4f   : > { %3728 = vmatmul.mubr.msk.bf16.gmra.mxu1 %vm282_vm1, %v4391_v62  ;;  %3765 = vmatprep.mubr.msk.bf16.mxu0 %vm282_vm1, %v4393_v63 }
  0x50   : > { %3731 = vmatprep.mubr.msk.bf16.mxu1 %vm282_vm1, %v4395_v0 }
  0x56   : > { %3766 = vmatmul.mubr.msk.bf16.gmra.mxu0 %vm282_vm1, %v4413_v18 }
  0x57   : > { %3732 = vmatmul.mubr.msk.bf16.gmra.mxu1 %vm282_vm1, %v4415_v19  ;;  %3769 = vmatprep.mubr.msk.bf16.mxu0 %vm282_vm1, %v4417_v20 }
  0x58   : > { %3735 = vmatprep.mubr.msk.bf16.mxu1 %vm282_vm1, %v4419_v21 }
  0x5e   : > { %3770 = vmatmul.mubr.msk.bf16.gmra.mxu0 %vm282_vm1, %v4437_v40 }
  0x5f   : > { %3736 = vmatmul.mubr.msk.bf16.gmra.mxu1 %vm282_vm1, %v4439_v41  ;;  %3773 = vmatprep.mubr.msk.bf16.mxu0 %vm282_vm1, %v4441_v42 }
  0x60   : > { %3739 = vmatprep.mubr.msk.bf16.mxu1 %vm282_vm1, %v4443_v51 }
  0x66   : > { %3774 = vmatmul.mubr.msk.bf16.gmra.mxu0 %vm282_vm1, %v4461_v2 }
  0x67   : > { %3740 = vmatmul.mubr.msk.bf16.gmra.mxu1 %vm282_vm1, %v4463_v3  ;;  %3777 = vmatprep.mubr.msk.bf16.mxu0 %vm282_vm1, %v4465_v5 }
  0x68   : > { %3743 = vmatprep.mubr.msk.bf16.mxu1 %vm282_vm1, %v4467_v6 }
  0x6e   : > { %3778 = vmatmul.mubr.msk.bf16.gmra.mxu0 %vm282_vm1, %v4481_v25 }
  0x6f   : > { %3744 = vmatmul.mubr.msk.bf16.gmra.mxu1 %vm282_vm1, %v4483_v26  ;;  %3817 = vmatprep.mubr.msk.bf16.mxu0 %vm282_vm1, %v4184_v12  ;;  %v3474_v12 = vld [vmem:[%s5315_s1 + $0x20] sm:$0xf] }
  0x70   : > { %3783 = vmatprep.mubr.msk.bf16.mxu1 %vm282_vm1, %v4301_v7 }
  0x76   : > { %3818 = vmatmul.mubr.msk.bf16.vlgmr.msra.gmra.mxu0 %vm282_vm1, %v4201_v22 }
  0x77   : > { %3784 = vmatmul.mubr.msk.bf16.vlgmr.msra.gmra.mxu1 %vm282_vm1, %v4305_v9  ;;  %3884 = vmatpush3.bf16.msra.mxu0 %v1985_v31 }
  0x78   : > { %3850 = vmatpush3.bf16.msra.mxu1 %v1690_v32  ;;  %3787 = vmatprep.mubr.msk.bf16.mxu1 %vm282_vm1, %v4343_v28 }
  0x79   : > { %3821 = vmatprep.mubr.msk.bf16.mxu0 %vm282_vm1, %v4231_v34  ;;  %3995 = vmatprep.subr.msk.bf16.mxu1 %vm331_vm0, %v3425_v33 }
  0x7a   : > { %3996 = vmatprep.subr.msk.bf16.mxu0 %vm331_vm0, %v3474_v12 }
  0x7e   : > { %3822 = vmatmul.mubr.msk.bf16.gmra.mxu0 %vm282_vm1, %v4237_v36 }
  0x7f   : > { %3788 = vmatmul.mubr.msk.bf16.gmra.mxu1 %vm282_vm1, %v4347_v30  ;;  %3825 = vmatprep.mubr.msk.bf16.mxu0 %vm282_vm1, %v4257_v46 }
  0x80   : > { %3791 = vmatprep.mubr.msk.bf16.mxu1 %vm282_vm1, %v4367_v44 }
  0x86   : > { %3826 = vmatmul.mubr.msk.bf16.gmra.mxu0 %vm282_vm1, %v4261_v48  ;;  %v2573_v48 = vsel %vm331_vm0, %v3474_v12, 0 }
  0x87   : > { %3792 = vmatmul.mubr.msk.bf16.gmra.mxu1 %vm282_vm1, %v4371_v50  ;;  %3829 = vmatprep.mubr.msk.bf16.mxu0 %vm282_vm1, %v4281_v58 }
  0x88   : > { %3795 = vmatprep.mubr.msk.bf16.mxu1 %vm282_vm1, %v4391_v62 }
  0x8e   : > { %3830 = vmatmul.mubr.msk.bf16.gmra.mxu0 %vm282_vm1, %v4182_v11  ;;  %v3276_v11 = vld [vmem:[%s4174_s23 + $0x181] sm:$0xff] }
  0x8f   : > { %3796 = vmatmul.mubr.msk.bf16.gmra.mxu1 %vm282_vm1, %v4395_v0  ;;  %3833 = vmatprep.mubr.msk.bf16.mxu0 %vm282_vm1, %v4191_v17  ;;  %v3277_v17 = vld [vmem:[%s4174_s23 + $0x189] sm:$0xff] }
  0x90   : > { %3799 = vmatprep.mubr.msk.bf16.mxu1 %vm282_vm1, %v4415_v19 }
  0x96   : > { %3834 = vmatmul.mubr.msk.bf16.gmra.mxu0 %vm282_vm1, %v4203_v23  ;;  %v3227_v23 = vld [vmem:[%s4174_s23 + $0x180] sm:$0xff] }
  0x97   : > { %3800 = vmatmul.mubr.msk.bf16.gmra.mxu1 %vm282_vm1, %v4419_v21  ;;  %3837 = vmatprep.mubr.msk.bf16.mxu0 %vm282_vm1, %v4235_v35  ;;  %v3228_v35 = vld [vmem:[%s4174_s23 + $0x188] sm:$0xff] }
  0x98   : > { %3803 = vmatprep.mubr.msk.bf16.mxu1 %vm282_vm1, %v4439_v41 }
  0x9e   : > { %3838 = vmatmul.mubr.msk.bf16.gmra.mxu0 %vm282_vm1, %v4239_v37  ;;  %v4565_v37 = vpack.c.bf16 %v3277_v17, %v3276_v11  ;;  %v3401_v17 = vld [vmem:[%s4174_s23 + $0x91] sm:$0xff] }
  0x9f   : > { %3804 = vmatmul.mubr.msk.bf16.gmra.mxu1 %vm282_vm1, %v4443_v51  ;;  %3841 = vmatprep.mubr.msk.bf16.mxu0 %vm282_vm1, %v4259_v47  ;;  %v1050_v47 = vpack.c.bf16 %v3228_v35, %v3227_v23  ;;  %v3402_v23 = vld [vmem:[%s4174_s23 + $0x99] sm:$0xff] }
  0xa0   : > { %3807 = vmatprep.mubr.msk.bf16.mxu1 %vm282_vm1, %v4463_v3 }
  0xa6   : > { %3842 = vmatmul.mubr.msk.bf16.gmra.mxu0 %vm282_vm1, %v4263_v49  ;;  %v2279_v49 = vsel %vm331_vm0, %v3425_v33, 0 }
  0xa7   : > { %3808 = vmatmul.mubr.msk.bf16.gmra.mxu1 %vm282_vm1, %v4467_v6  ;;  %3845 = vmatprep.mubr.msk.bf16.mxu0 %vm282_vm1, %v4283_v59 }
  0xa8   : > { %3811 = vmatprep.mubr.msk.bf16.mxu1 %vm282_vm1, %v4483_v26 }
  0xae   : > { %3846 = vmatmul.mubr.msk.bf16.gmra.mxu0 %vm282_vm1, %v4565_v37 }
  0xaf   : > { %3812 = vmatmul.mubr.msk.bf16.gmra.mxu1 %vm282_vm1, %v1050_v47  ;;  %3885 = vmatprep.mubr.msk.bf16.mxu0 %vm282_vm1, %v4305_v9 }
  0xb0   : > { %3851 = vmatprep.mubr.msk.bf16.mxu1 %vm282_vm1, %v4297_v4 }
  0xb6   : > { %3886 = vmatmul.mubr.msk.bf16.vlgmr.msra.gmra.mxu0 %vm282_vm1, %v4343_v28 }
  0xb7   : > { %3852 = vmatmul.mubr.msk.bf16.vlgmr.msra.gmra.mxu1 %vm282_vm1, %v4309_v13  ;;  %3952 = vmatpush3.bf16.msra.mxu0 %v2573_v48 }
  0xb8   : > { %3918 = vmatpush3.bf16.msra.mxu1 %v2279_v49  ;;  %3855 = vmatprep.mubr.msk.bf16.mxu1 %vm282_vm1, %v4339_v27 }
  0xb9   : > { %3889 = vmatprep.mubr.msk.bf16.mxu0 %vm282_vm1, %v4347_v30 }
  0xbe   : > { %3890 = vmatmul.mubr.msk.bf16.gmra.mxu0 %vm282_vm1, %v4367_v44 }
  0xbf   : > { %3856 = vmatmul.mubr.msk.bf16.gmra.mxu1 %vm282_vm1, %v4345_v29  ;;  %3893 = vmatprep.mubr.msk.bf16.mxu0 %vm282_vm1, %v4371_v50 }
  0xc0   : > { %3859 = vmatprep.mubr.msk.bf16.mxu1 %vm282_vm1, %v4365_v43 }
  0xc6   : > { %3894 = vmatmul.mubr.msk.bf16.gmra.mxu0 %vm282_vm1, %v4391_v62 }
  0xc7   : > { %3860 = vmatmul.mubr.msk.bf16.gmra.mxu1 %vm282_vm1, %v4369_v45  ;;  %3897 = vmatprep.mubr.msk.bf16.mxu0 %vm282_vm1, %v4395_v0 }
  0xc8   : > { %3863 = vmatprep.mubr.msk.bf16.mxu1 %vm282_vm1, %v4389_v61 }
  0xce   : > { %3898 = vmatmul.mubr.msk.bf16.gmra.mxu0 %vm282_vm1, %v4415_v19 }
  0xcf   : > { %3864 = vmatmul.mubr.msk.bf16.gmra.mxu1 %vm282_vm1, %v4393_v63  ;;  %3901 = vmatprep.mubr.msk.bf16.mxu0 %vm282_vm1, %v4419_v21 }
  0xd0   : > { %3867 = vmatprep.mubr.msk.bf16.mxu1 %vm282_vm1, %v4413_v18 }
  0xd6   : > { %v3683_v58 = vpop.f32.mrf.mxu0  ;;  %3902 = vmatmul.mubr.msk.bf16.gmra.mxu0 %vm282_vm1, %v4439_v41 }
  0xd7   : > { %v4610_v59 = vpop.f32.mrf.mxu1  ;;  %3868 = vmatmul.mubr.msk.bf16.gmra.mxu1 %vm282_vm1, %v4417_v20  ;;  %3905 = vmatprep.mubr.msk.bf16.mxu0 %vm282_vm1, %v4443_v51  ;;  %v3374_v51 = vld [vmem:[%s4174_s23 + $0x198] sm:$0xff] }
  0xd8   : > { %v369_v4 = vpop.f32.mrf.mxu0  ;;  %3871 = vmatprep.mubr.msk.bf16.mxu1 %vm282_vm1, %v4437_v40  ;;  %v1933_v60 = vpack.c.bf16 %v3375_v52, %v3374_v51 }
  0xd9   : > { %v4618_v7 = vpop.f32.mrf.mxu1 }
  0xda   : > { %v3684_v9 = vpop.f32.mrf.mxu0 }
  0xdb   : > { %v4620_v14 = vpop.f32.mrf.mxu1 }
  0xdc   : > { %v4622_v15 = vpop.f32.mrf.mxu0 }
  0xdd   : > { %v4624_v28 = vpop.f32.mrf.mxu1 }
  0xde   : > { %v4626_v30 = vpop.f32.mrf.mxu0  ;;  %3906 = vmatmul.mubr.msk.bf16.gmra.mxu0 %vm282_vm1, %v4463_v3  ;;  %v4673_v3 = vpack.c.bf16 %v3326_v55, %v3325_v54 }
  0xdf   : > { %v4630_v44 = vpop.f32.mrf.mxu1  ;;  %3872 = vmatmul.mubr.msk.bf16.gmra.mxu1 %vm282_vm1, %v4441_v42  ;;  %3909 = vmatprep.mubr.msk.bf16.mxu0 %vm282_vm1, %v4467_v6 }
  0xe0   : > { %v4636_v50 = vpop.f32.mrf.mxu0  ;;  %3875 = vmatprep.mubr.msk.bf16.mxu1 %vm282_vm1, %v4461_v2 }
  0xe1   : > { %v4640_v62 = vpop.f32.mrf.mxu1 }
  0xe2   : > { %v4642_v0 = vpop.f32.mrf.mxu0 }
  0xe3   : > { %v4644_v19 = vpop.f32.mrf.mxu1 }
  0xe4   : > { %v4646_v21 = vpop.f32.mrf.mxu0 }
  0xe5   : > { %v4648_v38 = vpop.f32.mrf.mxu1 }
  0xe6   : > { %v4650_v39 = vpop.f32.mrf.mxu0  ;;  %3910 = vmatmul.mubr.msk.bf16.gmra.mxu0 %vm282_vm1, %v4483_v26 }
  0xe7   : > { %v4654_v41 = vpop.f32.mrf.mxu1  ;;  %3876 = vmatmul.mubr.msk.bf16.gmra.mxu1 %vm282_vm1, %v4465_v5  ;;  %3913 = vmatprep.mubr.msk.bf16.mxu0 %vm282_vm1, %v1050_v47 }
  0xe8   : > { %v4661_v53 = vpop.f32.mrf.mxu0  ;;  %3879 = vmatprep.mubr.msk.bf16.mxu1 %vm282_vm1, %v4481_v25 }
  0xe9   : > { %v4667_v56 = vpop.f32.mrf.mxu1 }
  0xea   : > { %v4669_v57 = vpop.f32.mrf.mxu0 }
  0xeb   : > { %v4671_v1 = vpop.f32.mrf.mxu1 }
  0xec   : > { %v4675_v5 = vpop.f32.mrf.mxu0 }
  0xed   : > { %v4677_v6 = vpop.f32.mrf.mxu1 }
  0xee   : > { %v4679_v8 = vpop.f32.mrf.mxu0  ;;  %3914 = vmatmul.mubr.msk.bf16.gmra.mxu0 %vm282_vm1, %v1933_v60 }
  0xef   : > { %v4682_v10 = vpop.f32.mrf.mxu1  ;;  %3880 = vmatmul.mubr.msk.bf16.gmra.mxu1 %vm282_vm1, %v4673_v3  ;;  %3953 = vmatprep.mubr.msk.bf16.mxu0 %vm282_vm1, %v4309_v13 }
  0xf0   : > { %v4688_v16 = vpop.f32.mrf.mxu0  ;;  %3919 = vmatprep.mubr.msk.bf16.mxu1 %vm282_vm1, %v4201_v22 }
  0xf1   : > { %v4692_v24 = vpop.f32.mrf.mxu1 }
  0xf2   : > { %v4694_v25 = vpop.f32.mrf.mxu0 }
  0xf3   : > { %v4696_v26 = vpop.f32.mrf.mxu1 }
  0xf4   : > { %v4698_v31 = vpop.f32.mrf.mxu0 }
  0xf5   : > { %v4700_v32 = vpop.f32.mrf.mxu1 }
  0xf6   : > { %v3751_v33 = vpop.f32.mrf.mxu0  ;;  %3954 = vmatmul.mubr.msk.bf16.vlgmr.msra.gmra.mxu0 %vm282_vm1, %v4339_v27 }
  0xf7   : > { %v3717_v13 = vpop.f32.mrf.mxu1  ;;  %3920 = vmatmul.mubr.msk.bf16.vlgmr.msra.gmra.mxu1 %vm282_vm1, %v4231_v34  ;;  %3957 = vmatprep.mubr.msk.bf16.mxu0 %vm282_vm1, %v4345_v29  ;;  %v2216_v29 = vpack.c.bf16 %v3402_v23, %v3401_v17 }
  0xf8   : > { %v590_v22 = vadd.f32 %v3717_v13, %v3683_v58  ;;  %v843_v12 = vpop.f32.mrf.mxu0  ;;  %3923 = vmatprep.mubr.msk.bf16.mxu1 %vm282_vm1, %v4237_v36 }
  0xf9   : > { %v581_v11 = vpop.f32.mrf.mxu1 }
  0xfa   : > { %v4712_v35 = vadd.f32 %v3751_v33, %v590_v22  ;;  %v582_v47 = vadd.f32 %v581_v11, %v369_v4  ;;  %v3752_v48 = vpop.f32.mrf.mxu0  ;;  %v3403_v33 = vld [vmem:[%s4174_s23 + $0xa9] sm:$0xff]  ;;  %v3405_v22 = vld [vmem:[%s4174_s23 + $0xc1] sm:$0xff] }
  0xfb   : > { %v3718_v27 = vpop.f32.mrf.mxu1 }
  0xfc   : > { %v4714_v49 = vadd.f32 %v843_v12, %v582_v47  ;;  %v593_v34 = vadd.f32 %v3718_v27, %v3684_v9  ;;  %v846_v51 = vpop.f32.mrf.mxu0  ;;  %v3406_v12 = vld [vmem:[%s4174_s23 + $0xc9] sm:$0xff] }
  0xfd   : > { %v584_v58 = vpop.f32.mrf.mxu1 }
  0xfe   : > { %v4716_v52 = vadd.f32 %v3752_v48, %v593_v34  ;;  %v585_v36 = vadd.f32 %v584_v58, %v4622_v15  ;;  %v3755_v54 = vpop.f32.mrf.mxu0  ;;  %3958 = vmatmul.mubr.msk.bf16.gmra.mxu0 %vm282_vm1, %v4365_v43  ;;  %v3404_v15 = vld [vmem:[%s4174_s23 + $0xb1] sm:$0xff]  ;;  %v2218_v48 = vpack.c.bf16 %v3406_v12, %v3405_v22 }
  0xff   : > { %v3721_v4 = vpop.f32.mrf.mxu1  ;;  %3924 = vmatmul.mubr.msk.bf16.gmra.mxu1 %vm282_vm1, %v4257_v46  ;;  %3961 = vmatprep.mubr.msk.bf16.mxu0 %vm282_vm1, %v4369_v45  ;;  %v2217_v23 = vpack.c.bf16 %v3404_v15, %v3403_v33 }
 0x100   : > { %v4725_v9 = vadd.f32 %v846_v51, %v585_v36  ;;  %v606_v55 = vadd.f32 %v3721_v4, %v4626_v30  ;;  %v859_v60 = vpop.f32.mrf.mxu0  ;;  %3927 = vmatprep.mubr.msk.bf16.mxu1 %vm282_vm1, %v2216_v29  ;;  %v3408_v4 = vld [vmem:[%s4174_s23 + $0xe1] sm:$0xff] }
 0x101   : > { %v597_v13 = vpop.f32.mrf.mxu1 }
 0x102   : > { %v4733_v43 = vadd.f32 %v3755_v54, %v606_v55  ;;  %v598_v11 = vadd.f32 %v597_v13, %v4636_v50  ;;  %v3756_v46 = vpop.f32.mrf.mxu0  ;;  %v3407_v54 = vld [vmem:[%s4174_s23 + $0xd9] sm:$0xff]  ;;  %v3409_v55 = vld [vmem:[%s4174_s23 + $0xf1] sm:$0xff] }
 0x103   : > { %v3722_v17 = vpop.f32.mrf.mxu1  ;;  %v2219_v22 = vpack.c.bf16 %v3408_v4, %v3407_v54 }
 0x104   : > { %v4736_v45 = vadd.f32 %v859_v60, %v598_v11  ;;  %v609_v30 = vadd.f32 %v3722_v17, %v4642_v0  ;;  %v862_v47 = vpop.f32.mrf.mxu0  ;;  %v3410_v60 = vld [vmem:[%s4174_s23 + $0xf9] sm:$0xff] }
 0x105   : > { %v600_v27 = vpop.f32.mrf.mxu1  ;;  %v2220_v11 = vpack.c.bf16 %v3410_v60, %v3409_v55 }
 0x106   : > { %v4739_v34 = vadd.f32 %v3756_v46, %v609_v30  ;;  %v601_v51 = vadd.f32 %v600_v27, %v4646_v21  ;;  %v3759_v29 = vpop.f32.mrf.mxu0  ;;  %3962 = vmatmul.mubr.msk.bf16.gmra.mxu0 %vm282_vm1, %v4389_v61  ;;  %v3411_v27 = vld [vmem:[%s4174_s23 + $0x109] sm:$0xff] }
 0x107   : > { %v3725_v50 = vpop.f32.mrf.mxu1  ;;  %3928 = vmatmul.mubr.msk.bf16.gmra.mxu1 %vm282_vm1, %v2217_v23  ;;  %3965 = vmatprep.mubr.msk.bf16.mxu0 %vm282_vm1, %v4393_v63 }
 0x108   : > { %v4747_v0 = vadd.f32 %v862_v47, %v601_v51  ;;  %v622_v58 = vadd.f32 %v3725_v50, %v4650_v39  ;;  %v875_v36 = vpop.f32.mrf.mxu0  ;;  %3931 = vmatprep.mubr.msk.bf16.mxu1 %vm282_vm1, %v2218_v48  ;;  %v3412_v51 = vld [vmem:[%s4174_s23 + $0x111] sm:$0xff]  ;;  %v3414_v50 = vld [vmem:[%s4174_s23 + $0x129] sm:$0xff] }
 0x109   : > { %v613_v21 = vpop.f32.mrf.mxu1 }
 0x10a   : > { %v4755_v33 = vadd.f32 %v3759_v29, %v622_v58  ;;  %v614_v61 = vadd.f32 %v613_v21, %v4661_v53  ;;  %v3760_v15 = vpop.f32.mrf.mxu0  ;;  %v3413_v29 = vld [vmem:[%s4174_s23 + $0x121] sm:$0xff] }
 0x10b   : > { %v3726_v13 = vpop.f32.mrf.mxu1  ;;  %v2222_v55 = vpack.c.bf16 %v3414_v50, %v3413_v29 }
 0x10c   : > { %v4758_v63 = vadd.f32 %v875_v36, %v614_v61  ;;  %v625_v39 = vadd.f32 %v3726_v13, %v4669_v57  ;;  %v878_v12 = vpop.f32.mrf.mxu0 }
 0x10d   : > { %v616_v46 = vpop.f32.mrf.mxu1 }
 0x10e   : > { %v4761_v17 = vadd.f32 %v3760_v15, %v625_v39  ;;  %v617_v23 = vadd.f32 %v616_v46, %v4675_v5  ;;  %v3763_v30 = vpop.f32.mrf.mxu0  ;;  %3966 = vmatmul.mubr.msk.bf16.gmra.mxu0 %vm282_vm1, %v4413_v18  ;;  %v3467_v46 = vld [vmem:[%s4174_s23 + $0x15a] sm:$0xff] }
 0x10f   : > { %v3729_v53 = vpop.f32.mrf.mxu1  ;;  %3932 = vmatmul.mubr.msk.bf16.gmra.mxu1 %vm282_vm1, %v2219_v22  ;;  %3969 = vmatprep.mubr.msk.bf16.mxu0 %vm282_vm1, %v4417_v20  ;;  %v2221_v20 = vpack.c.bf16 %v3412_v51, %v3411_v27 }
 0x110   : > { %v4769_v57 = vadd.f32 %v878_v12, %v617_v23  ;;  %v638_v47 = vadd.f32 %v3729_v53, %v4679_v8  ;;  %v891_v48 = vpop.f32.mrf.mxu0  ;;  %3935 = vmatprep.mubr.msk.bf16.mxu1 %vm282_vm1, %v2220_v11  ;;  %v3466_v11 = vld [vmem:[%s4174_s23 + $0x152] sm:$0xff] }
 0x111   : > { %v629_v5 = vpop.f32.mrf.mxu1  ;;  %v2518_v51 = vpack.c.bf16 %v3467_v46, %v3466_v11 }
 0x112   : > { %v4777_v58 = vadd.f32 %v3763_v30, %v638_v47  ;;  %v630_v18 = vadd.f32 %v629_v5, %v4688_v16  ;;  %v3764_v36 = vpop.f32.mrf.mxu0  ;;  %v3417_v30 = vld [vmem:[%s4174_s23 + $0x151] sm:$0xff] }
 0x113   : > { %v3730_v54 = vpop.f32.mrf.mxu1 }
 0x114   : > { %v4780_v4 = vadd.f32 %v891_v48, %v630_v18  ;;  %v641_v8 = vadd.f32 %v3730_v54, %v4694_v25  ;;  %v894_v21 = vpop.f32.mrf.mxu0  ;;  %v3415_v25 = vld [vmem:[%s4174_s23 + $0x139] sm:$0xff] }
 0x115   : > { %v632_v60 = vpop.f32.mrf.mxu1 }
 0x116   : > { %v4783_v61 = vadd.f32 %v3764_v36, %v641_v8  ;;  %v633_v15 = vadd.f32 %v632_v60, %v4698_v31  ;;  %v3767_v16 = vpop.f32.mrf.mxu0  ;;  %3970 = vmatmul.mubr.msk.bf16.gmra.mxu0 %vm282_vm1, %v4437_v40  ;;  %v3416_v31 = vld [vmem:[%s4174_s23 + $0x141] sm:$0xff]  ;;  %v3418_v40 = vld [vmem:[%s4174_s23 + $0x159] sm:$0xff]  ;;  %v3468_v8 = vld [vmem:[%s4174_s23 + $0x16a] sm:$0xff] }
 0x117   : > { %v3733_v13 = vpop.f32.mrf.mxu1  ;;  %3936 = vmatmul.mubr.msk.bf16.gmra.mxu1 %vm282_vm1, %v2221_v20  ;;  %3973 = vmatprep.mubr.msk.bf16.mxu0 %vm282_vm1, %v4441_v42  ;;  %v2223_v27 = vpack.c.bf16 %v3416_v31, %v3415_v25  ;;  %v2224_v50 = vpack.c.bf16 %v3418_v40, %v3417_v30 }
 0x118   : > { %v4792_v22 = vadd.f32 %v894_v21, %v633_v15  ;;  %v654_v39 = vadd.f32 %v3733_v13, %v4610_v59  ;;  %v907_v12 = vpop.f32.mrf.mxu0  ;;  %3939 = vmatprep.mubr.msk.bf16.mxu1 %vm282_vm1, %v2222_v55  ;;  %v3419_v15 = vld [vmem:[%s4174_s23 + $0x169] sm:$0xff] }
 0x119   : > { %v645_v23 = vpop.f32.mrf.mxu1 }
 0x11a   : > { %v4801_v53 = vadd.f32 %v3767_v16, %v654_v39  ;;  %v646_v47 = vadd.f32 %v645_v23, %v4618_v7  ;;  %v3768_v48 = vpop.f32.mrf.mxu0 }
 0x11b   : > { %v3734_v42 = vpop.f32.mrf.mxu1 }
 0x11c   : > { %v4804_v59 = vadd.f32 %v907_v12, %v646_v47  ;;  %v657_v5 = vadd.f32 %v3734_v42, %v4620_v14  ;;  %v910_v29 = vpop.f32.mrf.mxu0  ;;  %v3469_v14 = vld [vmem:[%s4174_s23 + $0x172] sm:$0xff]  ;;  %v3473_v42 = vld [vmem:[%s4174_s23 + $0x1a2] sm:$0xff] }
 0x11d   : > { %v648_v18 = vpop.f32.mrf.mxu1  ;;  %v2519_v39 = vpack.c.bf16 %v3469_v14, %v3468_v8 }
 0x11e   : > { %v4807_v36 = vadd.f32 %v3768_v48, %v657_v5  ;;  %v649_v54 = vadd.f32 %v648_v18, %v4624_v28  ;;  %v3771_v7 = vpop.f32.mrf.mxu0  ;;  %3974 = vmatmul.mubr.msk.bf16.gmra.mxu0 %vm282_vm1, %v4461_v2  ;;  %v3420_v28 = vld [vmem:[%s4174_s23 + $0x171] sm:$0xff]  ;;  %v3472_v48 = vld [vmem:[%s4174_s23 + $0x19a] sm:$0xff] }
 0x11f   : > { %v3737_v20 = vpop.f32.mrf.mxu1  ;;  %3940 = vmatmul.mubr.msk.bf16.gmra.mxu1 %vm282_vm1, %v2223_v27  ;;  %3977 = vmatprep.mubr.msk.bf16.mxu0 %vm282_vm1, %v2518_v51  ;;  %v2225_v31 = vpack.c.bf16 %v3420_v28, %v3419_v15  ;;  %v3424_v5 = vld [vmem:[%s4174_s23 + $0x1a1] sm:$0xff] }
 0x120   : > { %v4816_v21 = vadd.f32 %v910_v29, %v649_v54  ;;  %v670_v55 = vadd.f32 %v3737_v20, %v4630_v44  ;;  %v923_v60 = vpop.f32.mrf.mxu0  ;;  %3943 = vmatprep.mubr.msk.bf16.mxu1 %vm282_vm1, %v2224_v50 }
 0x121   : > { %v661_v16 = vpop.f32.mrf.mxu1 }
 0x122   : > { %v4822_v13 = vadd.f32 %v3771_v7, %v670_v55  ;;  %v662_v2 = vadd.f32 %v661_v16, %v4640_v62  ;;  %v3772_v25 = vpop.f32.mrf.mxu0  ;;  %v2521_v7 = vpack.c.bf16 %v3473_v42, %v3472_v48 }
 0x123   : > { %v3738_v12 = vpop.f32.mrf.mxu1 }
 0x124   : > { %v4825_v11 = vadd.f32 %v923_v60, %v662_v2  ;;  %v673_v44 = vadd.f32 %v3738_v12, %v4644_v19  ;;  %v926_v46 = vpop.f32.mrf.mxu0 }
 0x125   : > { %v664_v23 = vpop.f32.mrf.mxu1 }
 0x126   : > { %v4828_v30 = vadd.f32 %v3772_v25, %v673_v44  ;;  %v665_v40 = vadd.f32 %v664_v23, %v4648_v38  ;;  %v3775_v47 = vpop.f32.mrf.mxu0  ;;  %3978 = vmatmul.mubr.msk.bf16.gmra.mxu0 %vm282_vm1, %v2519_v39  ;;  %v3423_v38 = vld [vmem:[%s4174_s23 + $0x199] sm:$0xff] }
 0x127   : > { %v3741_v62 = vpop.f32.mrf.mxu1  ;;  %3944 = vmatmul.mubr.msk.bf16.gmra.mxu1 %vm282_vm1, %v2225_v31  ;;  %3981 = vmatprep.mubr.msk.bf16.mxu0 %vm282_vm1, %v4673_v3  ;;  %v2227_v20 = vpack.c.bf16 %v3424_v5, %v3423_v38 }
 0x128   : > { %v4837_v19 = vadd.f32 %v926_v46, %v665_v40  ;;  %v686_v27 = vadd.f32 %v3741_v62, %v4654_v41  ;;  %v939_v51 = vpop.f32.mrf.mxu0  ;;  %3947 = vmatprep.mubr.msk.bf16.mxu1 %vm282_vm1, %v4565_v37 }
 0x129   : > { %v677_v29 = vpop.f32.mrf.mxu1 }
 0x12a   : > { %v4844_v50 = vadd.f32 %v3775_v47, %v686_v27  ;;  %v678_v18 = vadd.f32 %v677_v29, %v4667_v56  ;;  %v3776_v54 = vpop.f32.mrf.mxu0 }
 0x12b   : > { %v3742_v3 = vpop.f32.mrf.mxu1 }
 0x12c   : > { %v4847_v8 = vadd.f32 %v939_v51, %v678_v18  ;;  %v689_v14 = vadd.f32 %v3742_v3, %v4671_v1  ;;  %v942_v41 = vpop.f32.mrf.mxu0 }
 0x12d   : > { %v680_v55 = vpop.f32.mrf.mxu1 }
 0x12e   : > { %v4850_v60 = vadd.f32 %v3776_v54, %v689_v14  ;;  %v681_v37 = vadd.f32 %v680_v55, %v4677_v6  ;;  %v3779_v15 = vpop.f32.mrf.mxu0  ;;  %3982 = vmatmul.mubr.msk.bf16.gmra.mxu0 %vm282_vm1, %v2521_v7 }
 0x12f   : > { %v3745_v28 = vpop.f32.mrf.mxu1  ;;  %3948 = vmatmul.mubr.msk.bf16.gmra.mxu1 %vm282_vm1, %v2227_v20 }
 0x130   : > { %v4855_v56 = vadd.f32 %v942_v41, %v681_v37  ;;  %v702_v16 = vadd.f32 %v3745_v28, %v4682_v10  ;;  %v955_v2 = vpop.f32.mrf.mxu0 }
 0x131   : > { %v693_v25 = vpop.f32.mrf.mxu1 }
 0x132   : > { %v4858_v39 = vadd.f32 %v3779_v15, %v702_v16  ;;  %v694_v1 = vadd.f32 %v693_v25, %v4692_v24  ;;  %v3780_v12 = vpop.f32.mrf.mxu0 }
 0x133   : > { %v3746_v31 = vpop.f32.mrf.mxu1 }
 0x134   : > { %v4861_v44 = vadd.f32 %v955_v2, %v694_v1  ;;  %v705_v6 = vadd.f32 %v3746_v31, %v4696_v26  ;;  %v958_v46 = vpop.f32.mrf.mxu0 }
 0x135   : > { %v696_v23 = vpop.f32.mrf.mxu1 }
 0x136   : > { %v4864_v40 = vadd.f32 %v3780_v12, %v705_v6  ;;  %v697_v47 = vadd.f32 %v696_v23, %v4700_v32  ;;  %v3819_v62 = vpop.f32.mrf.mxu0 }
 0x137   : > { %v3785_v10 = vpop.f32.mrf.mxu1 }
 0x138   : > { %v4867_v48 = vadd.f32 %v958_v46, %v697_v47  ;;  %v1267_v42 = vadd.f32 %v3785_v10, %v4712_v35  ;;  %v1432_v27 = vpop.f32.mrf.mxu0 }
 0x139   : > { %v1138_v24 = vpop.f32.mrf.mxu1 }
 0x13a   : > { %v4870_v51 = vadd.f32 %v3819_v62, %v1267_v42  ;;  %v1265_v38 = vadd.f32 %v1138_v24, %v4714_v49  ;;  %v3820_v5 = vpop.f32.mrf.mxu0 }
 0x13b   : > { %v3786_v26 = vpop.f32.mrf.mxu1 }
 0x13c   : > { %v4873_v29 = vadd.f32 %v1432_v27, %v1265_v38  ;;  %v1268_v18 = vadd.f32 %v3786_v26, %v4716_v52  ;;  %v1435_v54 = vpop.f32.mrf.mxu0 }
 0x13d   : > { %v1141_v32 = vpop.f32.mrf.mxu1 }
 0x13e   : > { %v4876_v7 = vadd.f32 %v3820_v5, %v1268_v18  ;;  %v1266_v3 = vadd.f32 %v1141_v32, %v4725_v9  ;;  %v3823_v20 = vpop.f32.mrf.mxu0 }
 0x13f   : > { %v3789_v35 = vpop.f32.mrf.mxu1 }
 0x140   : > { %v4879_v14 = vadd.f32 %v1435_v54, %v1266_v3  ;;  %v1271_v41 = vadd.f32 %v3789_v35, %v4733_v43  ;;  %v1448_v55 = vpop.f32.mrf.mxu0 }
 0x141   : > { %v1154_v49 = vpop.f32.mrf.mxu1 }
 0x142   : > { %v4882_v37 = vadd.f32 %v3823_v20, %v1271_v41  ;;  %v1269_v15 = vadd.f32 %v1154_v49, %v4736_v45  ;;  %v3824_v28 = vpop.f32.mrf.mxu0 }
 0x143   : > { %v3790_v52 = vpop.f32.mrf.mxu1 }
 0x144   : > { %v4885_v16 = vadd.f32 %v1448_v55, %v1269_v15  ;;  %v1272_v2 = vadd.f32 %v3790_v52, %v4739_v34  ;;  %v1451_v25 = vpop.f32.mrf.mxu0 }
 0x145   : > { %v1157_v9 = vpop.f32.mrf.mxu1 }
 0x146   : > { %v4888_v1 = vadd.f32 %v3824_v28, %v1272_v2  ;;  %v1270_v12 = vadd.f32 %v1157_v9, %v4747_v0  ;;  %v3827_v31 = vpop.f32.mrf.mxu0 }
 0x147   : > { %v3793_v43 = vpop.f32.mrf.mxu1 }
 0x148   : > { %v4891_v6 = vadd.f32 %v1451_v25, %v1270_v12  ;;  %v1275_v46 = vadd.f32 %v3793_v43, %v4755_v33  ;;  %v1464_v23 = vpop.f32.mrf.mxu0 }
 0x149   : > { %v1170_v45 = vpop.f32.mrf.mxu1 }
 0x14a   : > { %v4894_v47 = vadd.f32 %v3827_v31, %v1275_v46  ;;  %v1273_v62 = vadd.f32 %v1170_v45, %v4758_v63  ;;  %v3828_v10 = vpop.f32.mrf.mxu0 }
 0x14b   : > { %v3794_v34 = vpop.f32.mrf.mxu1 }
 0x14c   : > { %v4897_v42 = vadd.f32 %v1464_v23, %v1273_v62  ;;  %v1276_v27 = vadd.f32 %v3794_v34, %v4761_v17  ;;  %v1467_v24 = vpop.f32.mrf.mxu0 }
 0x14d   : > { %v1173_v0 = vpop.f32.mrf.mxu1 }
 0x14e   : > { %v4900_v38 = vadd.f32 %v3828_v10, %v1276_v27  ;;  %v1274_v5 = vadd.f32 %v1173_v0, %v4769_v57  ;;  %v3831_v26 = vpop.f32.mrf.mxu0 }
 0x14f   : > { %v3797_v33 = vpop.f32.mrf.mxu1 }
 0x150   : > { %v4903_v18 = vadd.f32 %v1467_v24, %v1274_v5  ;;  %v1279_v54 = vadd.f32 %v3797_v33, %v4777_v58  ;;  %v1480_v32 = vpop.f32.mrf.mxu0 }
 0x151   : > { %v1186_v63 = vpop.f32.mrf.mxu1 }
 0x152   : > { %v4906_v3 = vadd.f32 %v3831_v26, %v1279_v54  ;;  %v1277_v20 = vadd.f32 %v1186_v63, %v4780_v4  ;;  %v3832_v35 = vpop.f32.mrf.mxu0 }
 0x153   : > { %v3798_v17 = vpop.f32.mrf.mxu1 }
 0x154   : > { %v4909_v41 = vadd.f32 %v1480_v32, %v1277_v20  ;;  %v1280_v55 = vadd.f32 %v3798_v17, %v4783_v61  ;;  %v1483_v49 = vpop.f32.mrf.mxu0 }
 0x155   : > { %v1189_v57 = vpop.f32.mrf.mxu1 }
 0x156   : > { %v4912_v15 = vadd.f32 %v3832_v35, %v1280_v55  ;;  %v1278_v28 = vadd.f32 %v1189_v57, %v4792_v22  ;;  %v3835_v52 = vpop.f32.mrf.mxu0 }
 0x157   : > { %v3801_v58 = vpop.f32.mrf.mxu1 }
 0x158   : > { %v4915_v2 = vadd.f32 %v1483_v49, %v1278_v28  ;;  %v1283_v25 = vadd.f32 %v3801_v58, %v4801_v53  ;;  %v1496_v9 = vpop.f32.mrf.mxu0 }
 0x159   : > { %v1202_v4 = vpop.f32.mrf.mxu1 }
 0x15a   : > { %v4918_v12 = vadd.f32 %v3835_v52, %v1283_v25  ;;  %v1281_v31 = vadd.f32 %v1202_v4, %v4804_v59  ;;  %v3836_v43 = vpop.f32.mrf.mxu0 }
 0x15b   : > { %v3802_v61 = vpop.f32.mrf.mxu1 }
 0x15c   : > { %v4921_v46 = vadd.f32 %v1496_v9, %v1281_v31  ;;  %v1284_v23 = vadd.f32 %v3802_v61, %v4807_v36  ;;  %v1499_v45 = vpop.f32.mrf.mxu0 }
 0x15d   : > { %v1205_v22 = vpop.f32.mrf.mxu1 }
 0x15e   : > { %v4924_v62 = vadd.f32 %v3836_v43, %v1284_v23  ;;  %v1282_v10 = vadd.f32 %v1205_v22, %v4816_v21  ;;  %v3839_v34 = vpop.f32.mrf.mxu0 }
 0x15f   : > { %v3805_v53 = vpop.f32.mrf.mxu1 }
 0x160   : > { %v4927_v27 = vadd.f32 %v1499_v45, %v1282_v10  ;;  %v1287_v24 = vadd.f32 %v3805_v53, %v4822_v13  ;;  %v1512_v0 = vpop.f32.mrf.mxu0 }
 0x161   : > { %v1218_v59 = vpop.f32.mrf.mxu1 }
 0x162   : > { %v4930_v5 = vadd.f32 %v3839_v34, %v1287_v24  ;;  %v1285_v26 = vadd.f32 %v1218_v59, %v4825_v11  ;;  %v3840_v33 = vpop.f32.mrf.mxu0 }
 0x163   : > { %v3806_v36 = vpop.f32.mrf.mxu1 }
 0x164   : > { %v4933_v54 = vadd.f32 %v1512_v0, %v1285_v26  ;;  %v1288_v32 = vadd.f32 %v3806_v36, %v4828_v30  ;;  %v1515_v63 = vpop.f32.mrf.mxu0 }
 0x165   : > { %v1221_v21 = vpop.f32.mrf.mxu1 }
 0x166   : > { %v4936_v20 = vadd.f32 %v3840_v33, %v1288_v32  ;;  %v1286_v35 = vadd.f32 %v1221_v21, %v4837_v19  ;;  %v3843_v17 = vpop.f32.mrf.mxu0 }
 0x167   : > { %v3809_v13 = vpop.f32.mrf.mxu1 }
 0x168   : > { %v4939_v55 = vadd.f32 %v1515_v63, %v1286_v35  ;;  %v1291_v49 = vadd.f32 %v3809_v13, %v4844_v50  ;;  %v1528_v57 = vpop.f32.mrf.mxu0 }
 0x169   : > { %v1234_v11 = vpop.f32.mrf.mxu1 }
 0x16a   : > { %v4942_v28 = vadd.f32 %v3843_v17, %v1291_v49  ;;  %v1289_v52 = vadd.f32 %v1234_v11, %v4847_v8  ;;  %v3844_v58 = vpop.f32.mrf.mxu0 }
 0x16b   : > { %v3810_v30 = vpop.f32.mrf.mxu1 }
 0x16c   : > { %v4945_v25 = vadd.f32 %v1528_v57, %v1289_v52  ;;  %v1292_v9 = vadd.f32 %v3810_v30, %v4850_v60  ;;  %v1531_v4 = vpop.f32.mrf.mxu0 }
 0x16d   : > { %v1237_v19 = vpop.f32.mrf.mxu1 }
 0x16e   : > { %v4948_v31 = vadd.f32 %v3844_v58, %v1292_v9  ;;  %v1290_v43 = vadd.f32 %v1237_v19, %v4855_v56  ;;  %v3847_v61 = vpop.f32.mrf.mxu0 }
 0x16f   : > { %v3813_v50 = vpop.f32.mrf.mxu1 }
 0x170   : > { %v4951_v23 = vadd.f32 %v1531_v4, %v1290_v43  ;;  %v1295_v45 = vadd.f32 %v3813_v50, %v4858_v39  ;;  %v1544_v22 = vpop.f32.mrf.mxu0 }
 0x171   : > { %v1250_v8 = vpop.f32.mrf.mxu1 }
 0x172   : > { %5318 = vst [vmem:[#allocation2_spill] sm:$0xff] %v4951_v23  ;;  %v4954_v10 = vadd.f32 %v3847_v61, %v1295_v45  ;;  %v1293_v34 = vadd.f32 %v1250_v8, %v4861_v44  ;;  %v3848_v53 = vpop.f32.mrf.mxu0 }
 0x173   : > { %v3814_v60 = vpop.f32.mrf.mxu1 }
 0x174   : > { %v4957_v24 = vadd.f32 %v1544_v22, %v1293_v34  ;;  %v1296_v0 = vadd.f32 %v3814_v60, %v4864_v40  ;;  %v1547_v59 = vpop.f32.mrf.mxu0 }
 0x175   : > { %v1253_v56 = vpop.f32.mrf.mxu1 }
 0x176   : > { %5319 = vst [vmem:[#allocation3_spill] sm:$0xff] %v4957_v24  ;;  %v4960_v26 = vadd.f32 %v3848_v53, %v1296_v0  ;;  %v1294_v33 = vadd.f32 %v1253_v56, %v4867_v48  ;;  %v3887_v36 = vpop.f32.mrf.mxu0 }
 0x177   : > { %v3853_v39 = vpop.f32.mrf.mxu1 }
 0x178   : > { %v4963_v32 = vadd.f32 %v1547_v59, %v1294_v33  ;;  %v1855_v63 = vadd.f32 %v3853_v39, %v4870_v51  ;;  %v2021_v21 = vpop.f32.mrf.mxu0 }
 0x179   : > { %v1726_v44 = vpop.f32.mrf.mxu1 }
 0x17a   : > { %5320 = vst [vmem:[#allocation4_spill] sm:$0xff] %v4963_v32  ;;  %v4966_v35 = vadd.f32 %v3887_v36, %v1855_v63  ;;  %v1853_v17 = vadd.f32 %v1726_v44, %v4873_v29  ;;  %v3888_v13 = vpop.f32.mrf.mxu0 }
 0x17b   : > { %v3854_v40 = vpop.f32.mrf.mxu1 }
 0x17c   : > { %v4969_v49 = vadd.f32 %v2021_v21, %v1853_v17  ;;  %v1856_v57 = vadd.f32 %v3854_v40, %v4876_v7  ;;  %v4972_v11 = vpop.f32.mrf.mxu0 }
 0x17d   : > { %v4974_v48 = vpop.f32.mrf.mxu1 }
 0x17e   : > { %v4976_v52 = vadd.f32 %v3888_v13, %v1856_v57  ;;  %v3891_v58 = vpop.f32.mrf.mxu0 }
 0x17f   : > { %v3857_v51 = vpop.f32.mrf.mxu1 }
 0x180   : > { %v1859_v30 = vadd.f32 %v3857_v51, %v4882_v37  ;;  %v4979_v9 = vpop.f32.mrf.mxu0 }
 0x181   : > { %v4981_v4 = vpop.f32.mrf.mxu1 }
 0x182   : > { %v4983_v29 = vadd.f32 %v3891_v58, %v1859_v30  ;;  %v3892_v19 = vpop.f32.mrf.mxu0 }
 0x183   : > { %v3858_v43 = vpop.f32.mrf.mxu1 }
 0x184   : > { %v1860_v7 = vadd.f32 %v3858_v43, %v4888_v1  ;;  %v4986_v61 = vpop.f32.mrf.mxu0 }
 0x185   : > { %v4988_v50 = vpop.f32.mrf.mxu1 }
 0x186   : > { %v4990_v45 = vadd.f32 %v3892_v19, %v1860_v7  ;;  %v3895_v22 = vpop.f32.mrf.mxu0 }
 0x187   : > { %v3861_v8 = vpop.f32.mrf.mxu1 }
 0x188   : > { %v1863_v37 = vadd.f32 %v3861_v8, %v4894_v47  ;;  %v4993_v34 = vpop.f32.mrf.mxu0 }
 0x189   : > { %v4995_v53 = vpop.f32.mrf.mxu1 }
 0x18a   : > { %v4997_v60 = vadd.f32 %v3895_v22, %v1863_v37  ;;  %v3896_v0 = vpop.f32.mrf.mxu0 }
 0x18b   : > { %v3862_v59 = vpop.f32.mrf.mxu1 }
 0x18c   : > { %v1864_v1 = vadd.f32 %v3862_v59, %v4900_v38  ;;  %v5000_v56 = vpop.f32.mrf.mxu0 }
 0x18d   : > { %v5002_v33 = vpop.f32.mrf.mxu1 }
 0x18e   : > { %v5004_v36 = vadd.f32 %v3896_v0, %v1864_v1  ;;  %v3899_v39 = vpop.f32.mrf.mxu0 }
 0x18f   : > { %v3865_v63 = vpop.f32.mrf.mxu1 }
 0x190   : > { %v1867_v47 = vadd.f32 %v3865_v63, %v4906_v3  ;;  %v5007_v21 = vpop.f32.mrf.mxu0 }
 0x191   : > { %v5009_v44 = vpop.f32.mrf.mxu1 }
 0x192   : > { %v5011_v17 = vadd.f32 %v3899_v39, %v1867_v47  ;;  %v3900_v13 = vpop.f32.mrf.mxu0 }
 0x193   : > { %v3866_v40 = vpop.f32.mrf.mxu1 }
 0x194   : > { %v1868_v38 = vadd.f32 %v3866_v40, %v4912_v15  ;;  %v5014_v57 = vpop.f32.mrf.mxu0 }
 0x195   : > { %v5016_v58 = vpop.f32.mrf.mxu1 }
 0x196   : > { %v5018_v51 = vadd.f32 %v3900_v13, %v1868_v38  ;;  %v3903_v30 = vpop.f32.mrf.mxu0 }
 0x197   : > { %v3869_v19 = vpop.f32.mrf.mxu1 }
 0x198   : > { %v1871_v3 = vadd.f32 %v3869_v19, %v4918_v12  ;;  %v5021_v43 = vpop.f32.mrf.mxu0 }
 0x199   : > { %v5023_v7 = vpop.f32.mrf.mxu1 }
 0x19a   : > { %v5025_v22 = vadd.f32 %v3903_v30, %v1871_v3  ;;  %v3904_v8 = vpop.f32.mrf.mxu0 }
 0x19b   : > { %v3870_v37 = vpop.f32.mrf.mxu1 }
 0x19c   : > { %v1872_v15 = vadd.f32 %v3870_v37, %v4924_v62  ;;  %v5028_v0 = vpop.f32.mrf.mxu0 }
 0x19d   : > { %v5030_v59 = vpop.f32.mrf.mxu1 }
 0x19e   : > { %v5032_v1 = vadd.f32 %v3904_v8, %v1872_v15  ;;  %v3907_v39 = vpop.f32.mrf.mxu0 }
 0x19f   : > { %v3873_v63 = vpop.f32.mrf.mxu1 }
 0x1a0   : > { %v1875_v12 = vadd.f32 %v3873_v63, %v4930_v5  ;;  %v5035_v47 = vpop.f32.mrf.mxu0 }
 0x1a1   : > { %v5037_v13 = vpop.f32.mrf.mxu1 }
 0x1a2   : > { %v5039_v40 = vadd.f32 %v3907_v39, %v1875_v12  ;;  %v3908_v38 = vpop.f32.mrf.mxu0 }
 0x1a3   : > { %v3874_v30 = vpop.f32.mrf.mxu1 }
 0x1a4   : > { %v1876_v62 = vadd.f32 %v3874_v30, %v4936_v20  ;;  %v5042_v19 = vpop.f32.mrf.mxu0 }
 0x1a5   : > { %v5044_v3 = vpop.f32.mrf.mxu1 }
 0x1a6   : > { %v5046_v8 = vadd.f32 %v3908_v38, %v1876_v62  ;;  %v3911_v37 = vpop.f32.mrf.mxu0 }
 0x1a7   : > { %v3877_v15 = vpop.f32.mrf.mxu1 }
 0x1a8   : > { %5321 = vst [vmem:[#allocation5_spill] sm:$0xff] %v5046_v8  ;;  %v1879_v5 = vadd.f32 %v3877_v15, %v4942_v28  ;;  %v5049_v63 = vpop.f32.mrf.mxu0 }
 0x1a9   : > { %5322 = vst [vmem:[#allocation6_spill] sm:$0xff] %v5049_v63  ;;  %v5051_v32 = vpop.f32.mrf.mxu1 }
 0x1aa   : > { %v5053_v39 = vadd.f32 %v3911_v37, %v1879_v5  ;;  %v3912_v12 = vpop.f32.mrf.mxu0 }
 0x1ab   : > { %v3878_v24 = vpop.f32.mrf.mxu1 }
 0x1ac   : > { %5323 = vst [vmem:[#allocation7_spill] sm:$0xff] %v5053_v39  ;;  %v1880_v20 = vadd.f32 %v3878_v24, %v4948_v31  ;;  %v5056_v30 = vpop.f32.mrf.mxu0 }
 0x1ad   : > { %5324 = vst [vmem:[#allocation8_spill] sm:$0xff] %v5056_v30  ;;  %v5058_v23 = vpop.f32.mrf.mxu1 }
 0x1ae   : > { %v5060_v38 = vadd.f32 %v3912_v12, %v1880_v20  ;;  %v3915_v62 = vpop.f32.mrf.mxu0 }
 0x1af   : > { %v3881_v8 = vpop.f32.mrf.mxu1 }
 0x1b0   : > { %5325 = vst [vmem:[#allocation9_spill] sm:$0xff] %v5060_v38  ;;  %v1883_v28 = vadd.f32 %v3881_v8, %v4954_v10  ;;  %v5063_v15 = vpop.f32.mrf.mxu0  ;;  %v1854_v10 = vadd.f32 %v4974_v48, %v4879_v14 }
 0x1b1   : > { %5326 = vst [vmem:[#allocation10_spill] sm:$0xff] %v5063_v15  ;;  %v5065_v63 = vpop.f32.mrf.mxu1 }
 0x1b2   : > { %5327 = vst [vmem:[#allocation11_spill] sm:$0xff] %v5065_v63  ;;  %v5067_v37 = vadd.f32 %v3915_v62, %v1883_v28  ;;  %v3916_v5 = vpop.f32.mrf.mxu0  ;;  %v2149_v63 = vadd.f32 %v4972_v11, %v1854_v10 }
 0x1b3   : > { %v3882_v39 = vpop.f32.mrf.mxu1 }
 0x1b4   : > { %5328 = vst [vmem:[#allocation12_spill] sm:$0xff] %v5067_v37  ;;  %v1884_v31 = vadd.f32 %v3882_v39, %v4960_v26  ;;  %v5070_v24 = vpop.f32.mrf.mxu0  ;;  %v1857_v26 = vadd.f32 %v4981_v4, %v4885_v16 }
 0x1b5   : > { %5329 = vst [vmem:[#allocation13_spill] sm:$0xff] %v5070_v24  ;;  %v5072_v30 = vpop.f32.mrf.mxu1 }
 0x1b6   : > { %5330 = vst [vmem:[#allocation14_spill] sm:$0xff] %v5072_v30  ;;  %v5074_v12 = vadd.f32 %v3916_v5, %v1884_v31  ;;  %v3955_v20 = vpop.f32.mrf.mxu0  ;;  %v2152_v30 = vadd.f32 %v4979_v9, %v1857_v26 }
 0x1b7   : > { %v3921_v38 = vpop.f32.mrf.mxu1 }
 0x1b8   : > { %5331 = vst [vmem:[#allocation15_spill] sm:$0xff] %v5074_v12  ;;  %v2609_v8 = vpop.f32.mrf.mxu0  ;;  %v2444_v39 = vadd.f32 %v3921_v38, %v4966_v35 }
 0x1b9   : > { %v2315_v15 = vpop.f32.mrf.mxu1 }
 0x1ba   : > { %v2442_v62 = vadd.f32 %v2315_v15, %v4969_v49  ;;  %v3956_v28 = vpop.f32.mrf.mxu0  ;;  %v1858_v49 = vadd.f32 %v4988_v50, %v4891_v6  ;;  %v5089_v11 = vadd.f32 %v3955_v20, %v2444_v39  ;;  %v1861_v39 = vadd.f32 %v4995_v53, %v4897_v42 }
 0x1bb   : > { %v3922_v37 = vpop.f32.mrf.mxu1 }
 0x1bc   : > { %v2612_v5 = vpop.f32.mrf.mxu0  ;;  %v2445_v31 = vadd.f32 %v3922_v37, %v4976_v52  ;;  %v5084_v24 = vadd.f32 %v2609_v8, %v2442_v62  ;;  %v2153_v9 = vadd.f32 %v4986_v61, %v1858_v49  ;;  %v2808_v20 = vmul.f32 %v5089_v11, %v5089_v11 }
 0x1bd   : > { %v2318_v12 = vpop.f32.mrf.mxu1 }
 0x1be   : > { %v2443_v14 = vadd.f32 %v2318_v12, %v2149_v63  ;;  %v3959_v48 = vpop.f32.mrf.mxu0  ;;  %v5093_v35 = vadd.f32 %v3956_v28, %v2445_v31  ;;  %v2806_v52 = vmul.f32 %v5084_v24, %v5084_v24 }
 0x1bf   : > { %v3925_v15 = vpop.f32.mrf.mxu1 }
 0x1c0   : > { %v5091_v10 = vadd.f32 %v2612_v5, %v2443_v14  ;;  %v2625_v16 = vpop.f32.mrf.mxu0  ;;  %v2448_v37 = vadd.f32 %v3925_v15, %v4983_v29  ;;  %v1862_v15 = vadd.f32 %v5002_v33, %v4903_v18 }
 0x1c1   : > { %v2331_v4 = vpop.f32.mrf.mxu1 }
 0x1c2   : > { %v2768_v63 = vadd.f32 %v5091_v10, %v5084_v24  ;;  %v2807_v6 = vmul.f32 %v5091_v10, %v5091_v10  ;;  %v2446_v50 = vadd.f32 %v2331_v4, %v2152_v30  ;;  %v3960_v38 = vpop.f32.mrf.mxu0  ;;  %v2809_v30 = vmul.f32 %v5093_v35, %v5093_v35 }
 0x1c3   : > { %v3926_v12 = vpop.f32.mrf.mxu1 }
 0x1c4   : > { %v2769_v8 = vadd.f32 %v2768_v63, %v5089_v11  ;;  %v2838_v62 = vadd.f32 %v2807_v6, %v2806_v52  ;;  %v5106_v28 = vadd.f32 %v2625_v16, %v2446_v50  ;;  %v2628_v26 = vpop.f32.mrf.mxu0  ;;  %v2449_v31 = vadd.f32 %v3926_v12, %v4990_v45 }
 0x1c5   : > { %v2334_v5 = vpop.f32.mrf.mxu1  ;;  %v5116_v16 = vadd.f32 %v3959_v48, %v2448_v37  ;;  %v2156_v50 = vadd.f32 %v4993_v34, %v1861_v39  ;;  %v1865_v37 = vadd.f32 %v5009_v44, %v4909_v41 }
 0x1c6   : > { %v2839_v61 = vadd.f32 %v2838_v62, %v2808_v20  ;;  %v2770_v29 = vadd.f32 %v2769_v8, %v5093_v35  ;;  %v2447_v14 = vadd.f32 %v2334_v5, %v2153_v9  ;;  %v3963_v49 = vpop.f32.mrf.mxu0  ;;  %v2810_v42 = vmul.f32 %v5106_v28, %v5106_v28 }
 0x1c7   : > { %v3929_v4 = vpop.f32.mrf.mxu1  ;;  %v5124_v12 = vadd.f32 %v3960_v38, %v2449_v31  ;;  %v2812_v34 = vmul.f32 %v5116_v16, %v5116_v16 }
 0x1c8   : > { %v2771_v52 = vadd.f32 %v2770_v29, %v5106_v28  ;;  %v2840_v53 = vadd.f32 %v2839_v61, %v2809_v30  ;;  %v5121_v63 = vadd.f32 %v2628_v26, %v2447_v14  ;;  %v2641_v6 = vpop.f32.mrf.mxu0  ;;  %v2452_v20 = vadd.f32 %v3929_v4, %v4997_v60 }
 0x1c9   : > { %v2347_v45 = vpop.f32.mrf.mxu1  ;;  %v2157_v26 = vadd.f32 %v5000_v56, %v1862_v15  ;;  %v2813_v41 = vmul.f32 %v5124_v12, %v5124_v12  ;;  %v2160_v14 = vadd.f32 %v5007_v21, %v1865_v37 }
 0x1ca   : > { %v2841_v9 = vadd.f32 %v2840_v53, %v2810_v42  ;;  %v2772_v18 = vadd.f32 %v2771_v52, %v5121_v63  ;;  %v2811_v33 = vmul.f32 %v5121_v63, %v5121_v63  ;;  %v3964_v48 = vpop.f32.mrf.mxu0  ;;  %v2450_v8 = vadd.f32 %v2347_v45, %v2156_v50 }
 0x1cb   : > { %v3930_v62 = vpop.f32.mrf.mxu1  ;;  %v5143_v15 = vadd.f32 %v3963_v49, %v2452_v20  ;;  %v1866_v50 = vadd.f32 %v5016_v58, %v4915_v2  ;;  %v1869_v20 = vadd.f32 %v5023_v7, %v4921_v46 }
 0x1cc   : > { %v2773_v38 = vadd.f32 %v2772_v18, %v5116_v16  ;;  %v2842_v39 = vadd.f32 %v2841_v9, %v2811_v33  ;;  %v2644_v30 = vpop.f32.mrf.mxu0  ;;  %v5136_v5 = vadd.f32 %v2641_v6, %v2450_v8  ;;  %v2453_v61 = vadd.f32 %v3930_v62, %v5004_v36 }
 0x1cd   : > { %v2350_v29 = vpop.f32.mrf.mxu1  ;;  %v2816_v62 = vmul.f32 %v5143_v15, %v5143_v15 }
 0x1ce   : > { %v2843_v60 = vadd.f32 %v2842_v39, %v2812_v34  ;;  %v2774_v44 = vadd.f32 %v2773_v38, %v5124_v12  ;;  %v2451_v31 = vadd.f32 %v2350_v29, %v2157_v26  ;;  %v3967_v56 = vpop.f32.mrf.mxu0  ;;  %v2814_v42 = vmul.f32 %v5136_v5, %v5136_v5 }
 0x1cf   : > { %v3933_v4 = vpop.f32.mrf.mxu1  ;;  %v5152_v45 = vadd.f32 %v3964_v48, %v2453_v61  ;;  %v2161_v34 = vadd.f32 %v5014_v57, %v1866_v50  ;;  %v2164_v29 = vadd.f32 %v5021_v43, %v1869_v20  ;;  %v1873_v50 = vadd.f32 %v5037_v13, %v4933_v54 }
 0x1d0   : > { %v2775_v52 = vadd.f32 %v2774_v44, %v5136_v5  ;;  %v2844_v36 = vadd.f32 %v2843_v60, %v2813_v41  ;;  %v5148_v53 = vadd.f32 %v2644_v30, %v2451_v31  ;;  %v2657_v6 = vpop.f32.mrf.mxu0  ;;  %v2456_v38 = vadd.f32 %v3933_v4, %v5011_v17 }
 0x1d1   : > { %v2363_v9 = vpop.f32.mrf.mxu1  ;;  %v2817_v30 = vmul.f32 %v5152_v45, %v5152_v45  ;;  %v1870_v41 = vadd.f32 %v5030_v59, %v4927_v27 }
 0x1d2   : > { %v2845_v18 = vadd.f32 %v2844_v36, %v2814_v42  ;;  %v2776_v21 = vadd.f32 %v2775_v52, %v5148_v53  ;;  %v2815_v49 = vmul.f32 %v5148_v53, %v5148_v53  ;;  %v2454_v33 = vadd.f32 %v2363_v9, %v2160_v14  ;;  %v3968_v37 = vpop.f32.mrf.mxu0 }
 0x1d3   : > { %v3934_v8 = vpop.f32.mrf.mxu1  ;;  %v5177_v42 = vadd.f32 %v3967_v56, %v2456_v38 }
 0x1d4   : > { %v2777_v2 = vadd.f32 %v2776_v21, %v5143_v15  ;;  %v2846_v58 = vadd.f32 %v2845_v18, %v2815_v49  ;;  %v5162_v48 = vadd.f32 %v2657_v6, %v2454_v33  ;;  %v2660_v26 = vpop.f32.mrf.mxu0  ;;  %v2457_v60 = vadd.f32 %v3934_v8, %v5018_v51 }
 0x1d5   : > { %v2366_v39 = vpop.f32.mrf.mxu1  ;;  %v2165_v21 = vadd.f32 %v5028_v0, %v1870_v41  ;;  %v2820_v54 = vmul.f32 %v5177_v42, %v5177_v42 }
 0x1d6   : > { %v2847_v61 = vadd.f32 %v2846_v58, %v2816_v62  ;;  %v2778_v46 = vadd.f32 %v2777_v2, %v5152_v45  ;;  %v3971_v7 = vpop.f32.mrf.mxu0  ;;  %v2455_v44 = vadd.f32 %v2366_v39, %v2161_v34  ;;  %v2818_v17 = vmul.f32 %v5162_v48, %v5162_v48 }
 0x1d7   : > { %v3937_v31 = vpop.f32.mrf.mxu1  ;;  %v5185_v9 = vadd.f32 %v3968_v37, %v2457_v60  ;;  %v2168_v34 = vadd.f32 %v5035_v47, %v1873_v50 }
 0x1d8   : > { %v2779_v57 = vadd.f32 %v2778_v46, %v5162_v48  ;;  %v2848_v14 = vadd.f32 %v2847_v61, %v2817_v30  ;;  %v2460_v4 = vadd.f32 %v3937_v31, %v5025_v22  ;;  %v2673_v52 = vpop.f32.mrf.mxu0  ;;  %v5179_v36 = vadd.f32 %v2660_v26, %v2455_v44 }
 0x1d9   : > { %v2379_v43 = vpop.f32.mrf.mxu1  ;;  %v1874_v30 = vadd.f32 %v5044_v3, %v4939_v55  ;;  %v1877_v55 = vadd.f32 %v5051_v32, %v4945_v25 }
 0x1da   : > { %v2849_v6 = vadd.f32 %v2848_v14, %v2818_v17  ;;  %v5181_v27 = vadd.f32 %v3971_v7, %v2460_v4  ;;  %v2458_v51 = vadd.f32 %v2379_v43, %v2164_v29  ;;  %v3972_v59 = vpop.f32.mrf.mxu0  ;;  %v2780_v18 = vadd.f32 %v2779_v57, %v5179_v36 }
 0x1db   : > { %v2819_v22 = vmul.f32 %v5179_v36, %v5179_v36  ;;  %v3938_v56 = vpop.f32.mrf.mxu1 }
 0x1dc   : > { %v2752_v49 = vadd.f32 %v2673_v52, %v2458_v51  ;;  %v2461_v33 = vadd.f32 %v3938_v56, %v5032_v1  ;;  %v2676_v20 = vpop.f32.mrf.mxu0  ;;  %v4010_v8 = vpack.i.bf16 %v5181_v27, %v5089_v11  ;;  %v2781_v13 = vadd.f32 %v2780_v18, %v5177_v42 }
 0x1dd   : > { %v2850_v37 = vadd.f32 %v2849_v6, %v2819_v22  ;;  %v2382_v62 = vpop.f32.mrf.mxu1  ;;  %v2821_v1 = vmul.f32 %v5185_v9, %v5185_v9  ;;  %v2169_v52 = vadd.f32 %v5042_v19, %v1874_v30 }
 0x1de   : > { %v5197_v2 = vadd.f32 %v3972_v59, %v2461_v33  ;;  %v2459_v58 = vadd.f32 %v2382_v62, %v2165_v21  ;;  %v4006_v26 = vpack.i.bf16 %v2752_v49, %v5084_v24  ;;  %v3975_v0 = vpop.f32.mrf.mxu0  ;;  %v2782_v11 = vadd.f32 %v2781_v13, %v5185_v9  ;;  %v5333_v21 = vld [vmem:[#allocation6_spill] sm:$0xff]  ;;  %v5335_v62 = vld [vmem:[#allocation7_spill] sm:$0xff] }
 0x1df   : > { %v2851_v38 = vadd.f32 %v2850_v37, %v2820_v54  ;;  %v3941_v39 = vpop.f32.mrf.mxu1  ;;  %v2822_v47 = vmul.f32 %v2752_v49, %v2752_v49  ;;  %v5334_v37 = vld [vmem:[#allocation2_spill] sm:$0xff] }
 0x1e0   : > { %v2753_v61 = vadd.f32 %v2676_v20, %v2459_v58  ;;  %v2464_v46 = vadd.f32 %v3941_v39, %v5039_v40  ;;  %4007 = vxpose.xlu0.b32.start [1/16] %v4006_v26, 128  ;;  %v2689_v7 = vpop.f32.mrf.mxu0  ;;  %v4012_v24 = vpack.i.bf16 %v5197_v2, %v5093_v35  ;;  %v2783_v29 = vadd.f32 %v2782_v11, %v2752_v49  ;;  %v5332_v35 = vld [vmem:[#allocation5_spill] sm:$0xff] }
 0x1e1   : > { %v2852_v41 = vadd.f32 %v2851_v38, %v2821_v1  ;;  %v2395_v60 = vpop.f32.mrf.mxu1  ;;  %v2172_v49 = vadd.f32 %v5333_v21, %v1877_v55  ;;  %v2825_v33 = vmul.f32 %v5197_v2, %v5197_v2  ;;  %v5342_v21 = vld [vmem:[#allocation14_spill] sm:$0xff] }
 0x1e2   : > { %v2823_v44 = vmul.f32 %v2753_v61, %v2753_v61  ;;  %v2462_v31 = vadd.f32 %v2395_v60, %v2168_v34  ;;  %v5209_v57 = vadd.f32 %v3975_v0, %v2464_v46  ;;  %v4008_v17 = vpack.i.bf16 %v2753_v61, %v5091_v10  ;;  %v3976_v14 = vpop.f32.mrf.mxu0  ;;  %v5338_v60 = vld [vmem:[#allocation8_spill] sm:$0xff] }
 0x1e3   : > { %v2853_v40 = vadd.f32 %v2852_v41, %v2822_v47  ;;  %v2784_v3 = vadd.f32 %v2783_v29, %v2753_v61  ;;  %v3942_v4 = vpop.f32.mrf.mxu1  ;;  %v2824_v10 = vmul.f32 %v5181_v27, %v5181_v27 }
 0x1e4   : > { %v2465_v43 = vadd.f32 %v3942_v4, %v5332_v35  ;;  %v2756_v6 = vadd.f32 %v2689_v7, %v2462_v31  ;;  %4009 = vxpose.xlu0.b32.cont [2/16] %v4008_v17, 128  ;;  %v2692_v51 = vpop.f32.mrf.mxu0  ;;  %v4018_v59 = vpack.i.bf16 %v5209_v57, %v5116_v16  ;;  %v5337_v7 = vld [vmem:[#allocation11_spill] sm:$0xff]  ;;  %v5339_v31 = vld [vmem:[#allocation9_spill] sm:$0xff] }
 0x1e5   : > { %v2785_v50 = vadd.f32 %v2784_v3, %v5181_v27  ;;  %v2854_v18 = vadd.f32 %v2853_v40, %v2823_v44  ;;  %v2398_v25 = vpop.f32.mrf.mxu1  ;;  %v1878_v27 = vadd.f32 %v5058_v23, %v5334_v37  ;;  %v5336_v23 = vld [vmem:[#allocation3_spill] sm:$0xff] }
 0x1e6   : > { %v2463_v32 = vadd.f32 %v2398_v25, %v2169_v52  ;;  %v5221_v22 = vadd.f32 %v3976_v14, %v2465_v43  ;;  %v3979_v56 = vpop.f32.mrf.mxu0  ;;  %v4014_v19 = vpack.i.bf16 %v2756_v6, %v5106_v28  ;;  %v2826_v1 = vmul.f32 %v2756_v6, %v2756_v6 }
 0x1e7   : > { %v2855_v20 = vadd.f32 %v2854_v18, %v2824_v10  ;;  %v2786_v54 = vadd.f32 %v2785_v50, %v5197_v2  ;;  %v3945_v13 = vpop.f32.mrf.mxu1  ;;  %v1881_v29 = vadd.f32 %v5337_v7, %v5336_v23  ;;  %v2173_v44 = vadd.f32 %v5338_v60, %v1878_v27  ;;  %v5340_v10 = vld [vmem:[#allocation10_spill] sm:$0xff]  ;;  %v5345_v23 = vld [vmem:[#allocation15_spill] sm:$0xff] }
 0x1e8   : > { %v2468_v58 = vadd.f32 %v3945_v13, %v5335_v62  ;;  %v2757_v26 = vadd.f32 %v2692_v51, %v2463_v32  ;;  %4011 = vxpose.xlu0.b32.cont [3/16] %v4010_v8, 128  ;;  %v2705_v0 = vpop.f32.mrf.mxu0  ;;  %v4020_v28 = vpack.i.bf16 %v5221_v22, %v5124_v12  ;;  %v2829_v50 = vmul.f32 %v5221_v22, %v5221_v22 }
 0x1e9   : > { %v2787_v34 = vadd.f32 %v2786_v54, %v2756_v6  ;;  %v2856_v38 = vadd.f32 %v2855_v20, %v2825_v33  ;;  %v2411_v11 = vpop.f32.mrf.mxu1  ;;  %v5343_v33 = vld [vmem:[#allocation12_spill] sm:$0xff] }
 0x1ea   : > { %v2827_v39 = vmul.f32 %v2757_v26, %v2757_v26  ;;  %v2466_v30 = vadd.f32 %v2411_v11, %v2172_v49  ;;  %v5233_v61 = vadd.f32 %v3979_v56, %v2468_v58  ;;  %v3980_v2 = vpop.f32.mrf.mxu0  ;;  %v4016_v46 = vpack.i.bf16 %v2757_v26, %v5121_v63  ;;  %v5341_v56 = vld [vmem:[#allocation4_spill] sm:$0xff] }
 0x1eb   : > { %v2857_v47 = vadd.f32 %v2856_v38, %v2826_v1  ;;  %v2788_v8 = vadd.f32 %v2787_v34, %v2757_v26  ;;  %v3946_v41 = vpop.f32.mrf.mxu1  ;;  %v2828_v63 = vmul.f32 %v5209_v57, %v5209_v57  ;;  %v1882_v49 = vadd.f32 %v5342_v21, %v5341_v56 }
 0x1ec   : > { %v2469_v17 = vadd.f32 %v3946_v41, %v5339_v31  ;;  %v5240_v14 = vadd.f32 %v2705_v0, %v2466_v30  ;;  %4013 = vxpose.xlu0.b32.cont [4/16] %v4012_v24, 128  ;;  %v2708_v55 = vpop.f32.mrf.mxu0  ;;  %v4026_v40 = vpack.i.bf16 %v5233_v61, %v5143_v15  ;;  %v2176_v24 = vadd.f32 %v5340_v10, %v1881_v29  ;;  %v5344_v30 = vld [vmem:[#allocation13_spill] sm:$0xff] }
 0x1ed   : > { %v2789_v3 = vadd.f32 %v2788_v8, %v5209_v57  ;;  %v2858_v4 = vadd.f32 %v2857_v47, %v2827_v39  ;;  %v2414_v52 = vpop.f32.mrf.mxu1  ;;  %v2832_v47 = vmul.f32 %v5233_v61, %v5233_v61 }
 0x1ee   : > { %v2467_v35 = vadd.f32 %v2414_v52, %v2173_v44  ;;  %v5247_v43 = vadd.f32 %v3980_v2, %v2469_v17  ;;  %v3983_v6 = vpop.f32.mrf.mxu0  ;;  %v4022_v51 = vpack.i.bf16 %v5240_v14, %v5136_v5  ;;  %v2830_v27 = vmul.f32 %v5240_v14, %v5240_v14 }
 0x1ef   : > { %v2859_v18 = vadd.f32 %v2858_v4, %v2828_v63  ;;  %v2790_v25 = vadd.f32 %v2789_v3, %v5221_v22  ;;  %v3949_v32 = vpop.f32.mrf.mxu1  ;;  %v2177_v2 = vadd.f32 %v5344_v30, %v1882_v49 }
 0x1f0   : > { %v2472_v20 = vadd.f32 %v3949_v32, %v5343_v33  ;;  %v2761_v54 = vadd.f32 %v2708_v55, %v2467_v35  ;;  %4015 = vxpose.xlu0.b32.cont [5/16] %v4014_v19, 128  ;;  %v2721_v13 = vpop.f32.mrf.mxu0  ;;  %v4028_v5 = vpack.i.bf16 %v5247_v43, %v5152_v45 }
 0x1f1   : > { %v2791_v37 = vadd.f32 %v2790_v25, %v5240_v14  ;;  %v2860_v62 = vadd.f32 %v2859_v18, %v2829_v50  ;;  %v2427_v58 = vpop.f32.mrf.mxu1  ;;  %v2833_v14 = vmul.f32 %v5247_v43, %v5247_v43 }
 0x1f2   : > { %v2831_v26 = vmul.f32 %v2761_v54, %v2761_v54  ;;  %v2470_v0 = vadd.f32 %v2427_v58, %v2176_v24  ;;  %v2766_v34 = vadd.f32 %v3983_v6, %v2472_v20  ;;  %v3984_v1 = vpop.f32.mrf.mxu0  ;;  %v4024_v38 = vpack.i.bf16 %v2761_v54, %v5148_v53 }
 0x1f3   : > { %v2861_v11 = vadd.f32 %v2860_v62, %v2830_v27  ;;  %v2792_v39 = vadd.f32 %v2791_v37, %v2761_v54  ;;  %v3950_v19 = vpop.f32.mrf.mxu1 }
 0x1f4   : > { %v2473_v45 = vadd.f32 %v3950_v19, %v5345_v23  ;;  %v2764_v7 = vadd.f32 %v2721_v13, %v2470_v0  ;;  %4017 = vxpose.xlu0.b32.cont [6/16] %v4016_v46, 128  ;;  %v4034_v29 = vpack.i.bf16 %v2766_v34, %v5177_v42  ;;  %v2724_v44 = vpop.f32.mrf.mxu0 }
 0x1f5   : > { %v2793_v8 = vadd.f32 %v2792_v39, %v5233_v61  ;;  %v2862_v41 = vadd.f32 %v2861_v11, %v2831_v26  ;;  %v2430_v60 = vpop.f32.mrf.mxu1 }
 0x1f6   : > { %v2471_v53 = vadd.f32 %v2430_v60, %v2177_v2  ;;  %v2767_v31 = vadd.f32 %v3984_v1, %v2473_v45  ;;  %v4030_v17 = vpack.i.bf16 %v2764_v7, %v5162_v48  ;;  %v2834_v4 = vmul.f32 %v2764_v7, %v2764_v7 }
 0x1f7   : > { %v2863_v55 = vadd.f32 %v2862_v41, %v2832_v47  ;;  %v2794_v46 = vadd.f32 %v2793_v8, %v5247_v43  ;;  %v2836_v43 = vmul.f32 %v2766_v34, %v2766_v34 }
 0x1f8   : > { %v2765_v63 = vadd.f32 %v2724_v44, %v2471_v53  ;;  %4019 = vxpose.xlu0.b32.cont [7/16] %v4018_v59, 128  ;;  %v4036_v42 = vpack.i.bf16 %v2767_v31, %v5185_v9  ;;  %v2837_v16 = vmul.f32 %v2767_v31, %v2767_v31 }
 0x1f9   : > { %v2795_v3 = vadd.f32 %v2794_v46, %v2764_v7  ;;  %v2864_v52 = vadd.f32 %v2863_v55, %v2833_v14 }
 0x1fa   : > { %v2835_v35 = vmul.f32 %v2765_v63, %v2765_v63  ;;  %v4032_v6 = vpack.i.bf16 %v2765_v63, %v5179_v36 }
 0x1fb   : > { %v2865_v48 = vadd.f32 %v2864_v52, %v2834_v4  ;;  %v2796_v10 = vadd.f32 %v2795_v3, %v2765_v63 }
 0x1fc   : > { %4021 = vxpose.xlu0.b32.cont [8/16] %v4020_v28, 128 }
 0x1fd   : > { %v2797_v24 = vadd.f32 %v2796_v10, %v2766_v34  ;;  %v2866_v50 = vadd.f32 %v2865_v48, %v2835_v35 }
 0x1ff   : > { %v2798_v57 = vadd.f32 %v2797_v24, %v2767_v31  ;;  %v2867_v59 = vadd.f32 %v2866_v50, %v2836_v43 }
 0x200   : > { %4023 = vxpose.xlu0.b32.cont [9/16] %v4022_v51, 128 }
 0x201   : > { %v2799_v9 = vrot.slane %v2798_v57, 4  ;;  %v2868_v18 = vadd.f32 %v2867_v59, %v2837_v16 }
 0x203   : > { %v2800_v25 = vadd.f32 %v2799_v9, %v2798_v57  ;;  %v2869_v32 = vrot.slane %v2868_v18, 4 }
 0x204   : > { %4025 = vxpose.xlu0.b32.cont [10/16] %v4024_v38, 128 }
 0x205   : > { %v2801_v36 = vrot.slane %v2800_v25, 2  ;;  %v2870_v56 = vadd.f32 %v2869_v32, %v2868_v18 }
 0x207   : > { %v2802_v21 = vadd.f32 %v2801_v36, %v2800_v25  ;;  %v2871_v12 = vrot.slane %v2870_v56, 2 }
 0x208   : > { %4027 = vxpose.xlu0.b32.cont [11/16] %v4026_v40, 128 }
 0x209   : > { %v2803_v22 = vrot.slane %v2802_v21, 1  ;;  %v2872_v28 = vadd.f32 %v2871_v12, %v2870_v56 }
 0x20b   : > { %v2804_v51 = vadd.f32 %v2803_v22, %v2802_v21  ;;  %v2873_v49 = vrot.slane %v2872_v28, 1 }
 0x20c   : > { %4029 = vxpose.xlu0.b32.cont [12/16] %v4028_v5, 128 }
 0x20d   : > { %2805 = vst [vmem:[%s181_s14] sm:$0x1] %v2804_v51  ;;  %v2874_v33 = vadd.f32 %v2873_v49, %v2872_v28 }
 0x20f   : > { %2875 = vst [vmem:[%s181_s14 + $0x1] sm:$0x1] %v2874_v33 }
 0x210   : > { %4031 = vxpose.xlu0.b32.cont [13/16] %v4030_v17, 128 }
 0x214   : > { %4033 = vxpose.xlu0.b32.cont [14/16] %v4032_v6, 128 }
 0x218   : > { %4035 = vxpose.xlu0.b32.cont [15/16] %v4034_v29, 128 }
 0x21c   : > { %4037 = vxpose.xlu0.b32.end [16/16] %v4036_v42, 128 }
 0x25c   : > { %v4038_v20 = vpop.trf.xlu0 }
 0x25d   : > { %v4042_v15 = vunpack.i.h.bf16 %v4038_v20  ;;  %v4039_v61 = vunpack.i.l.bf16 %v4038_v20 }
 0x25f   : > { %v3510_v40 = vpack.c.bf16 %v4042_v15, %v4039_v61 }
 0x260   : > { %v4043_v54 = vpop.trf.xlu0 }
 0x261   : > { %3036 = vst [vmem:[%s5293_s18] sm:$0xff] %v3510_v40  ;;  %v4047_v13 = vunpack.i.h.bf16 %v4043_v54  ;;  %v4044_v5 = vunpack.i.l.bf16 %v4043_v54 }
 0x263   : > { %v3511_v37 = vpack.c.bf16 %v4047_v13, %v4044_v5 }
 0x264   : > { %v4048_v27 = vpop.trf.xlu0 }
 0x265   : > { %3037 = vst [vmem:[%s5293_s18 + $0x8] sm:$0xff] %v3511_v37  ;;  %v4052_v62 = vunpack.i.h.bf16 %v4048_v27  ;;  %v4049_v58 = vunpack.i.l.bf16 %v4048_v27 }
 0x267   : > { %v3512_v26 = vpack.c.bf16 %v4052_v62, %v4049_v58 }
 0x268   : > { %v4053_v0 = vpop.trf.xlu0 }
 0x269   : > { %3038 = vst [vmem:[%s5293_s18 + $0x10] sm:$0xff] %v3512_v26  ;;  %v4057_v34 = vunpack.i.h.bf16 %v4053_v0  ;;  %v4054_v1 = vunpack.i.l.bf16 %v4053_v0 }
 0x26b   : > { %v3513_v38 = vpack.c.bf16 %v4057_v34, %v4054_v1 }
 0x26c   : > { %v4058_v11 = vpop.trf.xlu0 }
 0x26d   : > { %3039 = vst [vmem:[%s5293_s18 + $0x18] sm:$0xff] %v3513_v38  ;;  %v4062_v39 = vunpack.i.h.bf16 %v4058_v11  ;;  %v4059_v19 = vunpack.i.l.bf16 %v4058_v11 }
 0x26f   : > { %v3514_v30 = vpack.c.bf16 %v4062_v39, %v4059_v19 }
 0x270   : > { %v4063_v2 = vpop.trf.xlu0 }
 0x271   : > { %3040 = vst [vmem:[%s5293_s18 + $0x20] sm:$0xff] %v3514_v30  ;;  %v4067_v23 = vunpack.i.h.bf16 %v4063_v2  ;;  %v4064_v45 = vunpack.i.l.bf16 %v4063_v2 }
 0x273   : > { %v3515_v7 = vpack.c.bf16 %v4067_v23, %v4064_v45 }
 0x274   : > { %v4068_v29 = vpop.trf.xlu0 }
 0x275   : > { %3041 = vst [vmem:[%s5293_s18 + $0x28] sm:$0xff] %v3515_v7  ;;  %v4072_v47 = vunpack.i.h.bf16 %v4068_v29  ;;  %v4069_v8 = vunpack.i.l.bf16 %v4068_v29 }
 0x277   : > { %v3516_v41 = vpack.c.bf16 %v4072_v47, %v4069_v8 }
 0x278   : > { %v4073_v60 = vpop.trf.xlu0 }
 0x279   : > { %3042 = vst [vmem:[%s5293_s18 + $0x30] sm:$0xff] %v3516_v41  ;;  %v4077_v44 = vunpack.i.h.bf16 %v4073_v60  ;;  %v4074_v53 = vunpack.i.l.bf16 %v4073_v60 }
 0x27b   : > { %v3517_v31 = vpack.c.bf16 %v4077_v44, %v4074_v53 }
 0x27c   : > { %v4078_v17 = vpop.trf.xlu0 }
 0x27d   : > { %3043 = vst [vmem:[%s5293_s18 + $0x38] sm:$0xff] %v3517_v31  ;;  %v4082_v14 = vunpack.i.h.bf16 %v4078_v17  ;;  %v4079_v55 = vunpack.i.l.bf16 %v4078_v17 }
 0x27f   : > { %v3518_v46 = vpack.c.bf16 %v4082_v14, %v4079_v55 }
 0x280   : > { %v4083_v63 = vpop.trf.xlu0 }
 0x281   : > { %3044 = vst [vmem:[%s5293_s18 + $0x40] sm:$0xff] %v3518_v46  ;;  %v4087_v42 = vunpack.i.h.bf16 %v4083_v63  ;;  %v4084_v3 = vunpack.i.l.bf16 %v4083_v63 }
 0x283   : > { %v3519_v4 = vpack.c.bf16 %v4087_v42, %v4084_v3 }
 0x284   : > { %v4088_v52 = vpop.trf.xlu0 }
 0x285   : > { %3045 = vst [vmem:[%s5293_s18 + $0x48] sm:$0xff] %v3519_v4  ;;  %v4092_v35 = vunpack.i.h.bf16 %v4088_v52  ;;  %v4089_v6 = vunpack.i.l.bf16 %v4088_v52 }
 0x287   : > { %v3520_v48 = vpack.c.bf16 %v4092_v35, %v4089_v6 }
 0x288   : > { %v4093_v10 = vpop.trf.xlu0 }
 0x289   : > { %3046 = vst [vmem:[%s5293_s18 + $0x50] sm:$0xff] %v3520_v48  ;;  %v4097_v43 = vunpack.i.h.bf16 %v4093_v10  ;;  %v4094_v24 = vunpack.i.l.bf16 %v4093_v10 }
 0x28b   : > { %v3521_v50 = vpack.c.bf16 %v4097_v43, %v4094_v24 }
 0x28c   : > { %v4098_v16 = vpop.trf.xlu0 }
 0x28d   : > { %3047 = vst [vmem:[%s5293_s18 + $0x58] sm:$0xff] %v3521_v50  ;;  %v4102_v57 = vunpack.i.h.bf16 %v4098_v16  ;;  %v4099_v59 = vunpack.i.l.bf16 %v4098_v16 }
 0x28f   : > { %v3522_v9 = vpack.c.bf16 %v4102_v57, %v4099_v59 }
 0x290   : > { %v4103_v18 = vpop.trf.xlu0 }
 0x291   : > { %3048 = vst [vmem:[%s5293_s18 + $0x60] sm:$0xff] %v3522_v9  ;;  %v4107_v25 = vunpack.i.h.bf16 %v4103_v18  ;;  %v4104_v32 = vunpack.i.l.bf16 %v4103_v18 }
 0x293   : > { %v3523_v36 = vpack.c.bf16 %v4107_v25, %v4104_v32 }
 0x294   : > { %v4108_v56 = vpop.trf.xlu0 }
 0x295   : > { %3049 = vst [vmem:[%s5293_s18 + $0x68] sm:$0xff] %v3523_v36  ;;  %v4112_v21 = vunpack.i.h.bf16 %v4108_v56  ;;  %v4109_v12 = vunpack.i.l.bf16 %v4108_v56 }
 0x297   : > { %v3524_v22 = vpack.c.bf16 %v4112_v21, %v4109_v12 }
 0x298   : > { %v4113_v28 = vpop.trf.xlu0 }
 0x299   : > { %3050 = vst [vmem:[%s5293_s18 + $0x70] sm:$0xff] %v3524_v22  ;;  %v4117_v51 = vunpack.i.h.bf16 %v4113_v28  ;;  %v4114_v49 = vunpack.i.l.bf16 %v4113_v28 }
 0x29b   : > { %v3525_v33 = vpack.c.bf16 %v4117_v51, %v4114_v49 }
 0x29d   : > { %3051 = vst [vmem:[%s5293_s18 + $0x78] sm:$0xff] %v3525_v33 }
 0x29e PF: > { %s14_s12 = sadd.s32 1, %s4124_s12  }
 0x29f   : > { %p11_p4 = scmp.ge.s32.totalorder %s14_s12, 4  }
 0x2a1   :  { %13 = sbr.rel (!%p11_p4) target bundleno = 1 (0x1), region = 80 }

</bundles_post_ra>
